<compile_context>
chip_gen: v5e
topology: v5e:2x2
jax: 0.10.0
libtpu: 0.0.40
codegen_flags: <defaults>
</compile_context>

<pallas_src>
import numpy as np
import jax
import jax.numpy as jnp
from jax.experimental import pallas as pl
from jax.experimental.pallas import tpu as pltpu


def _round_up(n, m):
    return ((n + m - 1) // m) * m


# ---------------------------------------------------------------------------
# In-kernel helpers
# ---------------------------------------------------------------------------
def _elu(x):
    # torch.nn.ELU(alpha=1): x if x>0 else exp(x)-1.  exp(min(x,0))-1 keeps us
    # on guaranteed Mosaic primitives; |diff vs expm1| < 1e-7 in f32.
    return jnp.where(x > 0.0, x, jnp.exp(jnp.minimum(x, 0.0)) - 1.0)


def _mm(a, w):
    return jnp.dot(a, w, preferred_element_type=jnp.float32)


# ---------------------------------------------------------------------------
# Fused kernel: summary net + all affine coupling blocks (one grid step = one
# row tile of the batch; all weights VMEM-resident across steps).
# ---------------------------------------------------------------------------
def cinn_kernel(x_ref, y_ref,
                po_w1, po_b1, po_w2, po_b2,          # fused psi/omega FF
                phi_w1, phi_b1, phi_w2, phi_b2,      # phi FF
                w1a_all, b1_all,                     # hoisted x_hat fc1 (all blocks/halves)
                w1b_all, w2_all, b2_all,             # per-(block,half) stacked s/t weights
                v1_ref, v2_ref, ld_ref):
    TBN, _ = x_ref.shape
    TB, dd = y_ref.shape
    N = TBN // TB
    D = dd // 2
    PP = po_w2.shape[1] // 2          # padded psi/omega output width (>=128)
    HP = w1b_all.shape[2]             # padded fused s/t hidden width (>=128)
    DP = w2_all.shape[2] // 2         # padded s/t output width (>=128)
    n_halves = w1b_all.shape[0]       # 2 * n_blocks

    # ---- PermInvariantNetwork (psi & omega fused, outputs lane-padded) -----
    x2 = x_ref[...]                                            # (TB*N, F)
    h = jnp.maximum(_mm(x2, po_w1[...]) + po_b1[...], 0.0)     # ReLU
    po = _mm(h, po_w2[...]) + po_b2[...]                       # (TB*N, 2*PP)
    # 128-aligned splits; reshape only factors the row dim (free when N%8==0).
    psi = po[:, :PP].reshape(TB, N, PP)
    omg = po[:, PP:].reshape(TB, N, PP)
    m = jnp.max(omg, axis=1, keepdims=True)                    # softmax over N
    e = jnp.exp(omg - m)
    w = e * pl.reciprocal(jnp.sum(e, axis=1, keepdims=True), approx=False)
    phi_in = jnp.sum(w * psi, axis=1)                          # (TB, PP)
    h2 = jnp.maximum(_mm(phi_in, phi_w1[...]) + phi_b1[...], 0.0)
    xhat = _mm(h2, phi_w2[...]) + phi_b2[...]                  # (TB, summary_dim)

    # ---- Hoist: x_hat fc1 contributions (+bias) for ALL blocks & halves ----
    # One wide matmul off the serial chain; in-loop slices are 128-aligned.
    xc = _mm(xhat, w1a_all[...]) + b1_all[...]                 # (TB, n_halves*HP)

    # ---- Pad the two data halves to DP lanes once (padded cols stay 0) -----
    y = y_ref[...]
    if DP == D:
        u1 = y[:, :D]
        u2 = y[:, D:]
    else:
        zpad = jnp.zeros((TB, DP - D), jnp.float32)
        u1 = jnp.concatenate([y[:, :D], zpad], axis=-1)
        u2 = jnp.concatenate([y[:, D:], zpad], axis=-1)
    ld = jnp.zeros((TB, 1), jnp.float32)

    # ---- AffineCouplingBlocks, statically unrolled (n_blocks is small) -----
    # TODO(synk): switch to lax.fori_loop with dynamic weight indexing if
    # n_blocks grows past ~8 (bound code size / vreg live ranges).
    for j in range(0, n_halves, 2):
        # half 1: s1/t1 fused, conditioned on [x_hat, u2]
        hh = _elu(xc[:, j * HP:(j + 1) * HP] + _mm(u2, w1b_all[j]))
        o = _mm(hh, w2_all[j]) + b2_all[j]                     # (TB, 2*DP)
        ld1 = jnp.tanh(o[:, :DP])                              # padded cols -> 0
        v1 = u1 * jnp.exp(ld1) + o[:, DP:]
        # half 2: s2/t2 fused, conditioned on [x_hat, v1]
        hh = _elu(xc[:, (j + 1) * HP:(j + 2) * HP] + _mm(v1, w1b_all[j + 1]))
        o = _mm(hh, w2_all[j + 1]) + b2_all[j + 1]
        ld2 = jnp.tanh(o[:, :DP])
        v2 = u2 * jnp.exp(ld2) + o[:, DP:]

        ld = ld + jnp.sum(ld1, axis=1, keepdims=True) \
                + jnp.sum(ld2, axis=1, keepdims=True)
        u1, u2 = v1, v2

    # Lane-aligned stores; no in-kernel concat (assembled in the wrapper).
    v1_ref[...] = u1
    v2_ref[...] = u2
    ld_ref[...] = ld


# ---------------------------------------------------------------------------
# Wrapper: batch grid + BlockSpecs
# ---------------------------------------------------------------------------
def cinn_forward(x0, y, packed):
    """cINN.forward: returns (y_out, log_dets)."""
    B, N, F = x0.shape
    dd = y.shape[-1]
    assert dd % 2 == 0, "odd data_dim unsupported (inherited from the torch code)"
    D = dd // 2
    DP = packed[-1].shape[-1] // 2     # b2_all: (2*n_blocks, 1, 2*DP)

    # Row tile: single step for small batches; 256-row "parallel" tiles for
    # production batches (multiple of 8 sublanes, MXU-sized on v6e/v7x).
    TB = B if B <= 256 else 256
    n_tiles = pl.cdiv(B, TB)
    Bp = n_tiles * TB

    x_flat = x0.reshape(B * N, F)                  # flatten in the wrapper (free)
    y_in = y
    if Bp != B:
        x_flat = jnp.pad(x_flat, ((0, (Bp - B) * N), (0, 0)))
        y_in = jnp.pad(y, ((0, Bp - B), (0, 0)))

    # Weights: full-array VMEM blocks with a constant index_map -> DMA'd once,
    # resident across all grid steps.
    w_specs = [pl.BlockSpec(p.shape, (lambda nd: (lambda i: (0,) * nd))(p.ndim))
               for p in packed]

    v1, v2, ld = pl.pallas_call(
        cinn_kernel,
        grid=(n_tiles,),
        out_shape=(jax.ShapeDtypeStruct((Bp, DP), jnp.float32),
                   jax.ShapeDtypeStruct((Bp, DP), jnp.float32),
                   jax.ShapeDtypeStruct((Bp, 1), jnp.float32)),
        in_specs=[pl.BlockSpec((TB * N, F), lambda i: (i, 0)),
                  pl.BlockSpec((TB, dd), lambda i: (i, 0))] + w_specs,
        out_specs=(pl.BlockSpec((TB, DP), lambda i: (i, 0)),
                   pl.BlockSpec((TB, DP), lambda i: (i, 0)),
                   pl.BlockSpec((TB, 1), lambda i: (i, 0))),
        compiler_params=pltpu.CompilerParams(
            dimension_semantics=("parallel",),        # megacore / 2-TC split
            vmem_limit_bytes=32 * 1024 * 1024),       # fits v7x's smaller VMEM
    )(x_flat, y_in, *packed)

    y_out = jnp.concatenate([v1[:B, :D], v2[:B, :D]], axis=-1)   # free XLA slab
    return y_out, ld[:B, 0]


# ---------------------------------------------------------------------------
# Host-side weight packing: psi/omega fusion, s/t fusion, lane padding,
# per-(block,half) stacking, x_hat-weight hoist slab.
# ---------------------------------------------------------------------------
def pack_params(summary_params, block_params_list, summary_dim):
    pw1, pb1, pw2, pb2 = summary_params["psi"]
    ow1, ob1, ow2, ob2 = summary_params["omega"]
    fw1, fb1, fw2, fb2 = summary_params["phi"]
    Hs = pw1.shape[1]
    P = pw2.shape[1]
    PP = _round_up(P, 128)

    # fused psi/omega fc1: (F, 2*Hs)
    po_w1 = jnp.concatenate([pw1, ow1], axis=1)
    po_b1 = jnp.concatenate([pb1, ob1], axis=1)
    # block-diagonal fc2, each output half padded to PP lanes (psi -> [0:P),
    # omega -> [PP:PP+P)); padded lanes carry exact zeros end-to-end.
    po_w2 = jnp.zeros((2 * Hs, 2 * PP), jnp.float32)
    po_w2 = po_w2.at[:Hs, :P].set(pw2).at[Hs:, PP:PP + P].set(ow2)
    po_b2 = jnp.zeros((1, 2 * PP), jnp.float32)
    po_b2 = po_b2.at[:, :P].set(pb2).at[:, PP:PP + P].set(ob2)

    # phi fc1: input rows padded P -> PP (padded phi_in columns are zero).
    Hp = fw1.shape[1]
    phi_w1 = jnp.zeros((PP, Hp), jnp.float32).at[:P, :].set(fw1)
    phi_b1, phi_w2, phi_b2 = fb1, fw2, fb2

    S = summary_dim
    s1_0 = block_params_list[0][0]
    hid = s1_0[0].shape[1]
    D = s1_0[2].shape[1]
    HP = _round_up(2 * hid, 128)
    DP = _round_up(D, 128)

    w1a_list, w1b_list, b1_list, w2_list, b2_list = [], [], [], [], []
    for s1, t1, s2, t2 in block_params_list:
        for s, t in ((s1, t1), (s2, t2)):
            sw1, sb1, sw2, sb2 = s
            tw1, tb1, tw2, tb2 = t
            # fused fc1: fan_in (S + D), fan_out 2*hid padded to HP lanes
            w1 = jnp.zeros((S + D, HP), jnp.float32)
            w1 = w1.at[:, :hid].set(sw1).at[:, hid:2 * hid].set(tw1)
            b1 = jnp.zeros((1, HP), jnp.float32)
            b1 = b1.at[:, :hid].set(sb1).at[:, hid:2 * hid].set(tb1)
            w1a_list.append(w1[:S, :])                               # x_hat rows
            w1b = jnp.zeros((DP, HP), jnp.float32).at[:D, :].set(w1[S:, :])
            w1b_list.append(w1b)                                     # u/v rows (padded)
            b1_list.append(b1)
            # fused fc2, block-diagonal, each output half padded to DP lanes:
            # s-output in lanes [0:D), t-output in lanes [DP:DP+D)
            w2 = jnp.zeros((HP, 2 * DP), jnp.float32)
            w2 = w2.at[:hid, :D].set(sw2).at[hid:2 * hid, DP:DP + D].set(tw2)
            b2 = jnp.zeros((1, 2 * DP), jnp.float32)
            b2 = b2.at[:, :D].set(sb2).at[:, DP:DP + D].set(tb2)
            w2_list.append(w2)
            b2_list.append(b2)

    w1a_all = jnp.concatenate(w1a_list, axis=1)    # (S, 2*n_blocks*HP)  hoisted
    b1_all = jnp.concatenate(b1_list, axis=1)      # (1, 2*n_blocks*HP)
    w1b_all = jnp.stack(w1b_list, axis=0)          # (2*n_blocks, DP, HP)
    w2_all = jnp.stack(w2_list, axis=0)            # (2*n_blocks, HP, 2*DP)
    b2_all = jnp.stack(b2_list, axis=0)            # (2*n_blocks, 1, 2*DP)

    return (po_w1, po_b1, po_w2, po_b2, phi_w1, phi_b1, phi_w2, phi_b2,
            w1a_all, b1_all, w1b_all, w2_all, b2_all)


# ---------------------------------------------------------------------------
# Deterministic parameter init (mimics torch.nn.Linear default init shapes)
# ---------------------------------------------------------------------------
def init_linear(key, fan_in, fan_out):
    kw, kb = jax.random.split(key)
    bound = 1.0 / np.sqrt(fan_in)
    w = jax.random.uniform(kw, (fan_in, fan_out), jnp.float32, -bound, bound)
    b = jax.random.uniform(kb, (1, fan_out), jnp.float32, -bound, bound)
    return w, b


def init_feedforward(key, in_sz, hid_sz, out_sz):
    k1, k2 = jax.random.split(key)
    w1, b1 = init_linear(k1, in_sz, hid_sz)
    w2, b2 = init_linear(k2, hid_sz, out_sz)
    return (w1, b1, w2, b2)


def init_summary(key, n_in, n_hid_psi, n_out_psi, n_hid_phi, n_out):
    k1, k2, k3 = jax.random.split(key, 3)
    return {"psi": init_feedforward(k1, n_in, n_hid_psi, n_out_psi),
            "omega": init_feedforward(k2, n_in, n_hid_psi, n_out_psi),
            "phi": init_feedforward(k3, n_out_psi, n_hid_phi, n_out)}


def init_block(key, data_dim, summary_dim):
    D = data_dim // 2
    hid = (D + summary_dim) * 5
    # order: s1, t1, s2, t2; each FF input is cat([x_hat, u]) -> fan_in = S + D
    return tuple(init_feedforward(k, summary_dim + D, hid, D)
                 for k in jax.random.split(key, 4))


# ---------------------------------------------------------------------------
# Pure-JAX reference (faithful to the torch module, unfused weights)
# ---------------------------------------------------------------------------
def _ref_ff(x, p, act, tanh_out):
    w1, b1, w2, b2 = p
    h = x @ w1 + b1
    h = jnp.maximum(h, 0.0) if act == "relu" else jnp.where(h > 0, h, jnp.expm1(h))
    o = h @ w2 + b2
    return jnp.tanh(o) if tanh_out else o


def ref_forward(x0, y, sp, blocks):
    psi = _ref_ff(x0, sp["psi"], "relu", False)
    omg = _ref_ff(x0, sp["omega"], "relu", False)
    w = jax.nn.softmax(omg, axis=1)
    xhat = _ref_ff(jnp.sum(w * psi, axis=1), sp["phi"], "relu", False)
    D = y.shape[-1] // 2
    ld_total = jnp.zeros((y.shape[0],), jnp.float32)
    for s1, t1, s2, t2 in blocks:
        u1, u2 = y[:, :D], y[:, D:]
        ld1 = _ref_ff(jnp.concatenate([xhat, u2], axis=1), s1, "elu", True)
        v1 = u1 * jnp.exp(ld1) + _ref_ff(jnp.concatenate([xhat, u2], axis=1), t1, "elu", False)
        ld2 = _ref_ff(jnp.concatenate([xhat, v1], axis=1), s2, "elu", True)
        v2 = u2 * jnp.exp(ld2) + _ref_ff(jnp.concatenate([xhat, v1], axis=1), t2, "elu", False)
        y = jnp.concatenate([v1, v2], axis=-1)
        ld_total = ld_total + jnp.sum(ld1, axis=1) + jnp.sum(ld2, axis=1)
    return y, ld_total


# ---------------------------------------------------------------------------
if __name__ == "__main__":
    key = jax.random.PRNGKey(0)
    B, N_obs, F_in = 4, 8, 3
    data_dim, summary_dim = 8, 6               # even data_dim (odd is broken upstream)
    n_blocks = 3
    net_params = (F_in, 32, 16, 32, summary_dim)  # (in, hid_psi, out_psi, hid_phi, out)

    k_sum, k_blk, k_x0, k_y = jax.random.split(key, 4)
    summary_params = init_summary(k_sum, *net_params)
    block_params = [init_block(k, data_dim, summary_dim)
                    for k in jax.random.split(k_blk, n_blocks)]
    packed = pack_params(summary_params, block_params, summary_dim)

    x0 = jax.random.normal(k_x0, (B, N_obs, F_in), jnp.float32)   # x[0]
    y_in = jax.random.normal(k_y, (B, data_dim), jnp.float32)     # x[1]

    fwd = jax.jit(cinn_forward)
    y_out, log_dets = fwd(x0, y_in, packed)
    y_out = jax.block_until_ready(y_out)
    log_dets = jax.block_until_ready(log_dets)

    ref_y, ref_ld = ref_forward(x0, y_in, summary_params, block_params)
    assert y_out.shape == (B, data_dim) and log_dets.shape == (B,)
    assert np.allclose(np.asarray(y_out), np.asarray(ref_y), rtol=1e-4, atol=1e-4)
    assert np.allclose(np.asarray(log_dets), np.asarray(ref_ld), rtol=1e-4, atol=1e-4)
    print("KERNEL_OK")
</pallas_src>

<mosaic_0001>
module attributes {stable_mosaic.version = 11 : i64} {
  func.func @cinn_kernel(%arg0: i32, %arg1: memref<32x3xf32, #tpu.memory_space<vmem>>, %arg2: memref<4x8xf32, #tpu.memory_space<vmem>>, %arg3: memref<3x64xf32, #tpu.memory_space<vmem>>, %arg4: memref<1x64xf32, #tpu.memory_space<vmem>>, %arg5: memref<64x256xf32, #tpu.memory_space<vmem>>, %arg6: memref<1x256xf32, #tpu.memory_space<vmem>>, %arg7: memref<128x32xf32, #tpu.memory_space<vmem>>, %arg8: memref<1x32xf32, #tpu.memory_space<vmem>>, %arg9: memref<32x6xf32, #tpu.memory_space<vmem>>, %arg10: memref<1x6xf32, #tpu.memory_space<vmem>>, %arg11: memref<6x768xf32, #tpu.memory_space<vmem>>, %arg12: memref<1x768xf32, #tpu.memory_space<vmem>>, %arg13: memref<6x128x128xf32, #tpu.memory_space<vmem>>, %arg14: memref<6x128x256xf32, #tpu.memory_space<vmem>>, %arg15: memref<6x1x256xf32, #tpu.memory_space<vmem>>, %arg16: memref<4x128xf32, #tpu.memory_space<vmem>>, %arg17: memref<4x128xf32, #tpu.memory_space<vmem>>, %arg18: memref<4x1xf32, #tpu.memory_space<vmem>>) attributes {dimension_semantics = [#tpu.dimension_semantics<parallel>], iteration_bounds = array<i64: 1>, scalar_prefetch = 0 : i64, scratch_operands = 0 : i64, tpu.core_type = #tpu.core_type<tc>, window_params = [{transform_indices = @transform_0, window_bounds = array<i64: 32, 3>}, {transform_indices = @transform_1, window_bounds = array<i64: 4, 8>}, {pipeline_mode = #tpu.pipeline_mode<synchronous>, transform_indices = @transform_2, window_bounds = array<i64: 3, 64>}, {pipeline_mode = #tpu.pipeline_mode<synchronous>, transform_indices = @transform_3, window_bounds = array<i64: 1, 64>}, {pipeline_mode = #tpu.pipeline_mode<synchronous>, transform_indices = @transform_4, window_bounds = array<i64: 64, 256>}, {pipeline_mode = #tpu.pipeline_mode<synchronous>, transform_indices = @transform_5, window_bounds = array<i64: 1, 256>}, {pipeline_mode = #tpu.pipeline_mode<synchronous>, transform_indices = @transform_6, window_bounds = array<i64: 128, 32>}, {pipeline_mode = #tpu.pipeline_mode<synchronous>, transform_indices = @transform_7, window_bounds = array<i64: 1, 32>}, {pipeline_mode = #tpu.pipeline_mode<synchronous>, transform_indices = @transform_8, window_bounds = array<i64: 32, 6>}, {pipeline_mode = #tpu.pipeline_mode<synchronous>, transform_indices = @transform_9, window_bounds = array<i64: 1, 6>}, {pipeline_mode = #tpu.pipeline_mode<synchronous>, transform_indices = @transform_10, window_bounds = array<i64: 6, 768>}, {pipeline_mode = #tpu.pipeline_mode<synchronous>, transform_indices = @transform_11, window_bounds = array<i64: 1, 768>}, {pipeline_mode = #tpu.pipeline_mode<synchronous>, transform_indices = @transform_12, window_bounds = array<i64: 6, 128, 128>}, {pipeline_mode = #tpu.pipeline_mode<synchronous>, transform_indices = @transform_13, window_bounds = array<i64: 6, 128, 256>}, {pipeline_mode = #tpu.pipeline_mode<synchronous>, transform_indices = @transform_14, window_bounds = array<i64: 6, 1, 256>}, {transform_indices = @transform_15, window_bounds = array<i64: 4, 128>}, {transform_indices = @transform_16, window_bounds = array<i64: 4, 128>}, {transform_indices = @transform_17, window_bounds = array<i64: 4, 1>}]} {
    %c0 = arith.constant 0 : index
    %c0_0 = arith.constant 0 : index
    %0 = vector.load %arg1[%c0, %c0_0] : memref<32x3xf32, #tpu.memory_space<vmem>>, vector<32x3xf32>
    %c0_1 = arith.constant 0 : index
    %c0_2 = arith.constant 0 : index
    %1 = vector.load %arg3[%c0_1, %c0_2] : memref<3x64xf32, #tpu.memory_space<vmem>>, vector<3x64xf32>
    %cst = arith.constant dense<0.000000e+00> : vector<32x64xf32>
    %2 = tpu.matmul %0, %1, %cst {dimension_numbers = #tpu.dot_dimension_numbers<[1], [0], [0], [1], [0, 0, 1, 1], [], []>} : vector<32x3xf32>, vector<3x64xf32>, vector<32x64xf32> -> vector<32x64xf32>
    %c0_3 = arith.constant 0 : index
    %c0_4 = arith.constant 0 : index
    %3 = vector.load %arg4[%c0_3, %c0_4] : memref<1x64xf32, #tpu.memory_space<vmem>>, vector<1x64xf32>
    %4 = vector.broadcast %3 : vector<1x64xf32> to vector<32x64xf32>
    %5 = arith.addf %2, %4 : vector<32x64xf32>
    %cst_5 = arith.constant 0.000000e+00 : f32
    %6 = vector.broadcast %cst_5 : f32 to vector<32x64xf32>
    %7 = arith.maximumf %5, %6 : vector<32x64xf32>
    %c0_6 = arith.constant 0 : index
    %c0_7 = arith.constant 0 : index
    %8 = vector.load %arg5[%c0_6, %c0_7] : memref<64x256xf32, #tpu.memory_space<vmem>>, vector<64x256xf32>
    %cst_8 = arith.constant dense<0.000000e+00> : vector<32x256xf32>
    %9 = tpu.matmul %7, %8, %cst_8 {dimension_numbers = #tpu.dot_dimension_numbers<[1], [0], [0], [1], [0, 0, 1, 1], [], []>} : vector<32x64xf32>, vector<64x256xf32>, vector<32x256xf32> -> vector<32x256xf32>
    %c0_9 = arith.constant 0 : index
    %c0_10 = arith.constant 0 : index
    %10 = vector.load %arg6[%c0_9, %c0_10] : memref<1x256xf32, #tpu.memory_space<vmem>>, vector<1x256xf32>
    %11 = vector.broadcast %10 : vector<1x256xf32> to vector<32x256xf32>
    %12 = arith.addf %9, %11 : vector<32x256xf32>
    %13 = vector.extract_strided_slice %12 {offsets = [0, 0], sizes = [32, 128], strides = [1, 1]} : vector<32x256xf32> to vector<32x128xf32>
    %14 = vector.shape_cast %13 : vector<32x128xf32> to vector<4x8x128xf32>
    %15 = vector.extract_strided_slice %12 {offsets = [0, 128], sizes = [32, 128], strides = [1, 1]} : vector<32x256xf32> to vector<32x128xf32>
    %16 = vector.shape_cast %15 : vector<32x128xf32> to vector<4x8x128xf32>
    %cst_11 = arith.constant dense<0xFF800000> : vector<4x128xf32>
    %17 = vector.multi_reduction <maximumf>, %16, %cst_11 [1] : vector<4x8x128xf32> to vector<4x128xf32>
    %18 = vector.shape_cast %17 : vector<4x128xf32> to vector<4x1x128xf32>
    %19 = vector.broadcast %18 : vector<4x1x128xf32> to vector<4x8x128xf32>
    %20 = arith.subf %16, %19 : vector<4x8x128xf32>
    %21 = math.exp %20 : vector<4x8x128xf32>
    %cst_12 = arith.constant dense<0.000000e+00> : vector<4x128xf32>
    %22 = vector.multi_reduction <add>, %21, %cst_12 [1] : vector<4x8x128xf32> to vector<4x128xf32>
    %23 = vector.shape_cast %22 : vector<4x128xf32> to vector<4x1x128xf32>
    %24 = tpu.reciprocal %23 : vector<4x1x128xf32> -> vector<4x1x128xf32>
    %25 = vector.broadcast %24 : vector<4x1x128xf32> to vector<4x8x128xf32>
    %26 = arith.mulf %21, %25 : vector<4x8x128xf32>
    %27 = arith.mulf %26, %14 : vector<4x8x128xf32>
    %cst_13 = arith.constant dense<0.000000e+00> : vector<4x128xf32>
    %28 = vector.multi_reduction <add>, %27, %cst_13 [1] : vector<4x8x128xf32> to vector<4x128xf32>
    %c0_14 = arith.constant 0 : index
    %c0_15 = arith.constant 0 : index
    %29 = vector.load %arg7[%c0_14, %c0_15] : memref<128x32xf32, #tpu.memory_space<vmem>>, vector<128x32xf32>
    %cst_16 = arith.constant dense<0.000000e+00> : vector<4x32xf32>
    %30 = tpu.matmul %28, %29, %cst_16 {dimension_numbers = #tpu.dot_dimension_numbers<[1], [0], [0], [1], [0, 0, 1, 1], [], []>} : vector<4x128xf32>, vector<128x32xf32>, vector<4x32xf32> -> vector<4x32xf32>
    %c0_17 = arith.constant 0 : index
    %c0_18 = arith.constant 0 : index
    %31 = vector.load %arg8[%c0_17, %c0_18] : memref<1x32xf32, #tpu.memory_space<vmem>>, vector<1x32xf32>
    %32 = vector.broadcast %31 : vector<1x32xf32> to vector<4x32xf32>
    %33 = arith.addf %30, %32 : vector<4x32xf32>
    %cst_19 = arith.constant 0.000000e+00 : f32
    %34 = vector.broadcast %cst_19 : f32 to vector<4x32xf32>
    %35 = arith.maximumf %33, %34 : vector<4x32xf32>
    %c0_20 = arith.constant 0 : index
    %c0_21 = arith.constant 0 : index
    %36 = vector.load %arg9[%c0_20, %c0_21] : memref<32x6xf32, #tpu.memory_space<vmem>>, vector<32x6xf32>
    %cst_22 = arith.constant dense<0.000000e+00> : vector<4x6xf32>
    %37 = tpu.matmul %35, %36, %cst_22 {dimension_numbers = #tpu.dot_dimension_numbers<[1], [0], [0], [1], [0, 0, 1, 1], [], []>} : vector<4x32xf32>, vector<32x6xf32>, vector<4x6xf32> -> vector<4x6xf32>
    %c0_23 = arith.constant 0 : index
    %c0_24 = arith.constant 0 : index
    %38 = vector.load %arg10[%c0_23, %c0_24] : memref<1x6xf32, #tpu.memory_space<vmem>>, vector<1x6xf32>
    %39 = vector.broadcast %38 : vector<1x6xf32> to vector<4x6xf32>
    %40 = arith.addf %37, %39 : vector<4x6xf32>
    %c0_25 = arith.constant 0 : index
    %c0_26 = arith.constant 0 : index
    %41 = vector.load %arg11[%c0_25, %c0_26] : memref<6x768xf32, #tpu.memory_space<vmem>>, vector<6x768xf32>
    %cst_27 = arith.constant dense<0.000000e+00> : vector<4x768xf32>
    %42 = tpu.matmul %40, %41, %cst_27 {dimension_numbers = #tpu.dot_dimension_numbers<[1], [0], [0], [1], [0, 0, 1, 1], [], []>} : vector<4x6xf32>, vector<6x768xf32>, vector<4x768xf32> -> vector<4x768xf32>
    %c0_28 = arith.constant 0 : index
    %c0_29 = arith.constant 0 : index
    %43 = vector.load %arg12[%c0_28, %c0_29] : memref<1x768xf32, #tpu.memory_space<vmem>>, vector<1x768xf32>
    %44 = vector.broadcast %43 : vector<1x768xf32> to vector<4x768xf32>
    %45 = arith.addf %42, %44 : vector<4x768xf32>
    %c0_30 = arith.constant 0 : index
    %c0_31 = arith.constant 0 : index
    %46 = vector.load %arg2[%c0_30, %c0_31] : memref<4x8xf32, #tpu.memory_space<vmem>>, vector<4x8xf32>
    %cst_32 = arith.constant 0.000000e+00 : f32
    %47 = vector.broadcast %cst_32 : f32 to vector<4x124xf32>
    %48 = vector.extract_strided_slice %46 {offsets = [0, 0], sizes = [4, 4], strides = [1, 1]} : vector<4x8xf32> to vector<4x4xf32>
    %49 = tpu.concatenate %48, %47 in 1 : vector<4x4xf32>, vector<4x124xf32> -> vector<4x128xf32>
    %50 = vector.extract_strided_slice %46 {offsets = [0, 4], sizes = [4, 4], strides = [1, 1]} : vector<4x8xf32> to vector<4x4xf32>
    %51 = tpu.concatenate %50, %47 in 1 : vector<4x4xf32>, vector<4x124xf32> -> vector<4x128xf32>
    %cst_33 = arith.constant 0.000000e+00 : f32
    %52 = vector.broadcast %cst_33 : f32 to vector<4x1xf32>
    %53 = vector.extract_strided_slice %45 {offsets = [0, 0], sizes = [4, 128], strides = [1, 1]} : vector<4x768xf32> to vector<4x128xf32>
    %c0_34 = arith.constant 0 : index
    %c0_35 = arith.constant 0 : index
    %c0_36 = arith.constant 0 : index
    %54 = vector.load %arg13[%c0_34, %c0_35, %c0_36] : memref<6x128x128xf32, #tpu.memory_space<vmem>>, vector<1x128x128xf32>
    %55 = vector.shape_cast %54 : vector<1x128x128xf32> to vector<128x128xf32>
    %cst_37 = arith.constant dense<0.000000e+00> : vector<4x128xf32>
    %56 = tpu.matmul %51, %55, %cst_37 {dimension_numbers = #tpu.dot_dimension_numbers<[1], [0], [0], [1], [0, 0, 1, 1], [], []>} : vector<4x128xf32>, vector<128x128xf32>, vector<4x128xf32> -> vector<4x128xf32>
    %57 = arith.addf %53, %56 : vector<4x128xf32>
    %cst_38 = arith.constant 0.000000e+00 : f32
    %58 = vector.broadcast %cst_38 : f32 to vector<4x128xf32>
    %59 = arith.cmpf ogt, %57, %58 : vector<4x128xf32>
    %cst_39 = arith.constant 0.000000e+00 : f32
    %60 = vector.broadcast %cst_39 : f32 to vector<4x128xf32>
    %61 = arith.minimumf %57, %60 : vector<4x128xf32>
    %62 = math.exp %61 : vector<4x128xf32>
    %cst_40 = arith.constant 1.000000e+00 : f32
    %63 = vector.broadcast %cst_40 : f32 to vector<4x128xf32>
    %64 = arith.subf %62, %63 : vector<4x128xf32>
    %65 = arith.select %59, %57, %64 : vector<4x128xi1>, vector<4x128xf32>
    %c0_41 = arith.constant 0 : index
    %c0_42 = arith.constant 0 : index
    %c0_43 = arith.constant 0 : index
    %66 = vector.load %arg14[%c0_41, %c0_42, %c0_43] : memref<6x128x256xf32, #tpu.memory_space<vmem>>, vector<1x128x256xf32>
    %67 = vector.shape_cast %66 : vector<1x128x256xf32> to vector<128x256xf32>
    %cst_44 = arith.constant dense<0.000000e+00> : vector<4x256xf32>
    %68 = tpu.matmul %65, %67, %cst_44 {dimension_numbers = #tpu.dot_dimension_numbers<[1], [0], [0], [1], [0, 0, 1, 1], [], []>} : vector<4x128xf32>, vector<128x256xf32>, vector<4x256xf32> -> vector<4x256xf32>
    %c0_45 = arith.constant 0 : index
    %c0_46 = arith.constant 0 : index
    %c0_47 = arith.constant 0 : index
    %69 = vector.load %arg15[%c0_45, %c0_46, %c0_47] : memref<6x1x256xf32, #tpu.memory_space<vmem>>, vector<1x1x256xf32>
    %70 = vector.shape_cast %69 : vector<1x1x256xf32> to vector<1x256xf32>
    %71 = vector.broadcast %70 : vector<1x256xf32> to vector<4x256xf32>
    %72 = arith.addf %68, %71 : vector<4x256xf32>
    %73 = vector.extract_strided_slice %72 {offsets = [0, 0], sizes = [4, 128], strides = [1, 1]} : vector<4x256xf32> to vector<4x128xf32>
    %74 = math.tanh %73 : vector<4x128xf32>
    %75 = math.exp %74 : vector<4x128xf32>
    %76 = arith.mulf %49, %75 : vector<4x128xf32>
    %77 = vector.extract_strided_slice %72 {offsets = [0, 128], sizes = [4, 128], strides = [1, 1]} : vector<4x256xf32> to vector<4x128xf32>
    %78 = arith.addf %76, %77 : vector<4x128xf32>
    %79 = vector.extract_strided_slice %45 {offsets = [0, 128], sizes = [4, 128], strides = [1, 1]} : vector<4x768xf32> to vector<4x128xf32>
    %c1 = arith.constant 1 : index
    %c0_48 = arith.constant 0 : index
    %c0_49 = arith.constant 0 : index
    %80 = vector.load %arg13[%c1, %c0_48, %c0_49] : memref<6x128x128xf32, #tpu.memory_space<vmem>>, vector<1x128x128xf32>
    %81 = vector.shape_cast %80 : vector<1x128x128xf32> to vector<128x128xf32>
    %cst_50 = arith.constant dense<0.000000e+00> : vector<4x128xf32>
    %82 = tpu.matmul %78, %81, %cst_50 {dimension_numbers = #tpu.dot_dimension_numbers<[1], [0], [0], [1], [0, 0, 1, 1], [], []>} : vector<4x128xf32>, vector<128x128xf32>, vector<4x128xf32> -> vector<4x128xf32>
    %83 = arith.addf %79, %82 : vector<4x128xf32>
    %cst_51 = arith.constant 0.000000e+00 : f32
    %84 = vector.broadcast %cst_51 : f32 to vector<4x128xf32>
    %85 = arith.cmpf ogt, %83, %84 : vector<4x128xf32>
    %cst_52 = arith.constant 0.000000e+00 : f32
    %86 = vector.broadcast %cst_52 : f32 to vector<4x128xf32>
    %87 = arith.minimumf %83, %86 : vector<4x128xf32>
    %88 = math.exp %87 : vector<4x128xf32>
    %cst_53 = arith.constant 1.000000e+00 : f32
    %89 = vector.broadcast %cst_53 : f32 to vector<4x128xf32>
    %90 = arith.subf %88, %89 : vector<4x128xf32>
    %91 = arith.select %85, %83, %90 : vector<4x128xi1>, vector<4x128xf32>
    %c1_54 = arith.constant 1 : index
    %c0_55 = arith.constant 0 : index
    %c0_56 = arith.constant 0 : index
    %92 = vector.load %arg14[%c1_54, %c0_55, %c0_56] : memref<6x128x256xf32, #tpu.memory_space<vmem>>, vector<1x128x256xf32>
    %93 = vector.shape_cast %92 : vector<1x128x256xf32> to vector<128x256xf32>
    %cst_57 = arith.constant dense<0.000000e+00> : vector<4x256xf32>
    %94 = tpu.matmul %91, %93, %cst_57 {dimension_numbers = #tpu.dot_dimension_numbers<[1], [0], [0], [1], [0, 0, 1, 1], [], []>} : vector<4x128xf32>, vector<128x256xf32>, vector<4x256xf32> -> vector<4x256xf32>
    %c1_58 = arith.constant 1 : index
    %c0_59 = arith.constant 0 : index
    %c0_60 = arith.constant 0 : index
    %95 = vector.load %arg15[%c1_58, %c0_59, %c0_60] : memref<6x1x256xf32, #tpu.memory_space<vmem>>, vector<1x1x256xf32>
    %96 = vector.shape_cast %95 : vector<1x1x256xf32> to vector<1x256xf32>
    %97 = vector.broadcast %96 : vector<1x256xf32> to vector<4x256xf32>
    %98 = arith.addf %94, %97 : vector<4x256xf32>
    %99 = vector.extract_strided_slice %98 {offsets = [0, 0], sizes = [4, 128], strides = [1, 1]} : vector<4x256xf32> to vector<4x128xf32>
    %100 = math.tanh %99 : vector<4x128xf32>
    %101 = math.exp %100 : vector<4x128xf32>
    %102 = arith.mulf %51, %101 : vector<4x128xf32>
    %103 = vector.extract_strided_slice %98 {offsets = [0, 128], sizes = [4, 128], strides = [1, 1]} : vector<4x256xf32> to vector<4x128xf32>
    %104 = arith.addf %102, %103 : vector<4x128xf32>
    %cst_61 = arith.constant dense<0.000000e+00> : vector<4xf32>
    %105 = vector.multi_reduction <add>, %74, %cst_61 [1] : vector<4x128xf32> to vector<4xf32>
    %106 = vector.shape_cast %105 : vector<4xf32> to vector<4x1xf32>
    %107 = arith.addf %52, %106 : vector<4x1xf32>
    %cst_62 = arith.constant dense<0.000000e+00> : vector<4xf32>
    %108 = vector.multi_reduction <add>, %100, %cst_62 [1] : vector<4x128xf32> to vector<4xf32>
    %109 = vector.shape_cast %108 : vector<4xf32> to vector<4x1xf32>
    %110 = arith.addf %107, %109 : vector<4x1xf32>
    %111 = vector.extract_strided_slice %45 {offsets = [0, 256], sizes = [4, 128], strides = [1, 1]} : vector<4x768xf32> to vector<4x128xf32>
    %c2 = arith.constant 2 : index
    %c0_63 = arith.constant 0 : index
    %c0_64 = arith.constant 0 : index
    %112 = vector.load %arg13[%c2, %c0_63, %c0_64] : memref<6x128x128xf32, #tpu.memory_space<vmem>>, vector<1x128x128xf32>
    %113 = vector.shape_cast %112 : vector<1x128x128xf32> to vector<128x128xf32>
    %cst_65 = arith.constant dense<0.000000e+00> : vector<4x128xf32>
    %114 = tpu.matmul %104, %113, %cst_65 {dimension_numbers = #tpu.dot_dimension_numbers<[1], [0], [0], [1], [0, 0, 1, 1], [], []>} : vector<4x128xf32>, vector<128x128xf32>, vector<4x128xf32> -> vector<4x128xf32>
    %115 = arith.addf %111, %114 : vector<4x128xf32>
    %cst_66 = arith.constant 0.000000e+00 : f32
    %116 = vector.broadcast %cst_66 : f32 to vector<4x128xf32>
    %117 = arith.cmpf ogt, %115, %116 : vector<4x128xf32>
    %cst_67 = arith.constant 0.000000e+00 : f32
    %118 = vector.broadcast %cst_67 : f32 to vector<4x128xf32>
    %119 = arith.minimumf %115, %118 : vector<4x128xf32>
    %120 = math.exp %119 : vector<4x128xf32>
    %cst_68 = arith.constant 1.000000e+00 : f32
    %121 = vector.broadcast %cst_68 : f32 to vector<4x128xf32>
    %122 = arith.subf %120, %121 : vector<4x128xf32>
    %123 = arith.select %117, %115, %122 : vector<4x128xi1>, vector<4x128xf32>
    %c2_69 = arith.constant 2 : index
    %c0_70 = arith.constant 0 : index
    %c0_71 = arith.constant 0 : index
    %124 = vector.load %arg14[%c2_69, %c0_70, %c0_71] : memref<6x128x256xf32, #tpu.memory_space<vmem>>, vector<1x128x256xf32>
    %125 = vector.shape_cast %124 : vector<1x128x256xf32> to vector<128x256xf32>
    %cst_72 = arith.constant dense<0.000000e+00> : vector<4x256xf32>
    %126 = tpu.matmul %123, %125, %cst_72 {dimension_numbers = #tpu.dot_dimension_numbers<[1], [0], [0], [1], [0, 0, 1, 1], [], []>} : vector<4x128xf32>, vector<128x256xf32>, vector<4x256xf32> -> vector<4x256xf32>
    %c2_73 = arith.constant 2 : index
    %c0_74 = arith.constant 0 : index
    %c0_75 = arith.constant 0 : index
    %127 = vector.load %arg15[%c2_73, %c0_74, %c0_75] : memref<6x1x256xf32, #tpu.memory_space<vmem>>, vector<1x1x256xf32>
    %128 = vector.shape_cast %127 : vector<1x1x256xf32> to vector<1x256xf32>
    %129 = vector.broadcast %128 : vector<1x256xf32> to vector<4x256xf32>
    %130 = arith.addf %126, %129 : vector<4x256xf32>
    %131 = vector.extract_strided_slice %130 {offsets = [0, 0], sizes = [4, 128], strides = [1, 1]} : vector<4x256xf32> to vector<4x128xf32>
    %132 = math.tanh %131 : vector<4x128xf32>
    %133 = math.exp %132 : vector<4x128xf32>
    %134 = arith.mulf %78, %133 : vector<4x128xf32>
    %135 = vector.extract_strided_slice %130 {offsets = [0, 128], sizes = [4, 128], strides = [1, 1]} : vector<4x256xf32> to vector<4x128xf32>
    %136 = arith.addf %134, %135 : vector<4x128xf32>
    %137 = vector.extract_strided_slice %45 {offsets = [0, 384], sizes = [4, 128], strides = [1, 1]} : vector<4x768xf32> to vector<4x128xf32>
    %c3 = arith.constant 3 : index
    %c0_76 = arith.constant 0 : index
    %c0_77 = arith.constant 0 : index
    %138 = vector.load %arg13[%c3, %c0_76, %c0_77] : memref<6x128x128xf32, #tpu.memory_space<vmem>>, vector<1x128x128xf32>
    %139 = vector.shape_cast %138 : vector<1x128x128xf32> to vector<128x128xf32>
    %cst_78 = arith.constant dense<0.000000e+00> : vector<4x128xf32>
    %140 = tpu.matmul %136, %139, %cst_78 {dimension_numbers = #tpu.dot_dimension_numbers<[1], [0], [0], [1], [0, 0, 1, 1], [], []>} : vector<4x128xf32>, vector<128x128xf32>, vector<4x128xf32> -> vector<4x128xf32>
    %141 = arith.addf %137, %140 : vector<4x128xf32>
    %cst_79 = arith.constant 0.000000e+00 : f32
    %142 = vector.broadcast %cst_79 : f32 to vector<4x128xf32>
    %143 = arith.cmpf ogt, %141, %142 : vector<4x128xf32>
    %cst_80 = arith.constant 0.000000e+00 : f32
    %144 = vector.broadcast %cst_80 : f32 to vector<4x128xf32>
    %145 = arith.minimumf %141, %144 : vector<4x128xf32>
    %146 = math.exp %145 : vector<4x128xf32>
    %cst_81 = arith.constant 1.000000e+00 : f32
    %147 = vector.broadcast %cst_81 : f32 to vector<4x128xf32>
    %148 = arith.subf %146, %147 : vector<4x128xf32>
    %149 = arith.select %143, %141, %148 : vector<4x128xi1>, vector<4x128xf32>
    %c3_82 = arith.constant 3 : index
    %c0_83 = arith.constant 0 : index
    %c0_84 = arith.constant 0 : index
    %150 = vector.load %arg14[%c3_82, %c0_83, %c0_84] : memref<6x128x256xf32, #tpu.memory_space<vmem>>, vector<1x128x256xf32>
    %151 = vector.shape_cast %150 : vector<1x128x256xf32> to vector<128x256xf32>
    %cst_85 = arith.constant dense<0.000000e+00> : vector<4x256xf32>
    %152 = tpu.matmul %149, %151, %cst_85 {dimension_numbers = #tpu.dot_dimension_numbers<[1], [0], [0], [1], [0, 0, 1, 1], [], []>} : vector<4x128xf32>, vector<128x256xf32>, vector<4x256xf32> -> vector<4x256xf32>
    %c3_86 = arith.constant 3 : index
    %c0_87 = arith.constant 0 : index
    %c0_88 = arith.constant 0 : index
    %153 = vector.load %arg15[%c3_86, %c0_87, %c0_88] : memref<6x1x256xf32, #tpu.memory_space<vmem>>, vector<1x1x256xf32>
    %154 = vector.shape_cast %153 : vector<1x1x256xf32> to vector<1x256xf32>
    %155 = vector.broadcast %154 : vector<1x256xf32> to vector<4x256xf32>
    %156 = arith.addf %152, %155 : vector<4x256xf32>
    %157 = vector.extract_strided_slice %156 {offsets = [0, 0], sizes = [4, 128], strides = [1, 1]} : vector<4x256xf32> to vector<4x128xf32>
    %158 = math.tanh %157 : vector<4x128xf32>
    %159 = math.exp %158 : vector<4x128xf32>
    %160 = arith.mulf %104, %159 : vector<4x128xf32>
    %161 = vector.extract_strided_slice %156 {offsets = [0, 128], sizes = [4, 128], strides = [1, 1]} : vector<4x256xf32> to vector<4x128xf32>
    %162 = arith.addf %160, %161 : vector<4x128xf32>
    %cst_89 = arith.constant dense<0.000000e+00> : vector<4xf32>
    %163 = vector.multi_reduction <add>, %132, %cst_89 [1] : vector<4x128xf32> to vector<4xf32>
    %164 = vector.shape_cast %163 : vector<4xf32> to vector<4x1xf32>
    %165 = arith.addf %110, %164 : vector<4x1xf32>
    %cst_90 = arith.constant dense<0.000000e+00> : vector<4xf32>
    %166 = vector.multi_reduction <add>, %158, %cst_90 [1] : vector<4x128xf32> to vector<4xf32>
    %167 = vector.shape_cast %166 : vector<4xf32> to vector<4x1xf32>
    %168 = arith.addf %165, %167 : vector<4x1xf32>
    %169 = vector.extract_strided_slice %45 {offsets = [0, 512], sizes = [4, 128], strides = [1, 1]} : vector<4x768xf32> to vector<4x128xf32>
    %c4 = arith.constant 4 : index
    %c0_91 = arith.constant 0 : index
    %c0_92 = arith.constant 0 : index
    %170 = vector.load %arg13[%c4, %c0_91, %c0_92] : memref<6x128x128xf32, #tpu.memory_space<vmem>>, vector<1x128x128xf32>
    %171 = vector.shape_cast %170 : vector<1x128x128xf32> to vector<128x128xf32>
    %cst_93 = arith.constant dense<0.000000e+00> : vector<4x128xf32>
    %172 = tpu.matmul %162, %171, %cst_93 {dimension_numbers = #tpu.dot_dimension_numbers<[1], [0], [0], [1], [0, 0, 1, 1], [], []>} : vector<4x128xf32>, vector<128x128xf32>, vector<4x128xf32> -> vector<4x128xf32>
    %173 = arith.addf %169, %172 : vector<4x128xf32>
    %cst_94 = arith.constant 0.000000e+00 : f32
    %174 = vector.broadcast %cst_94 : f32 to vector<4x128xf32>
    %175 = arith.cmpf ogt, %173, %174 : vector<4x128xf32>
    %cst_95 = arith.constant 0.000000e+00 : f32
    %176 = vector.broadcast %cst_95 : f32 to vector<4x128xf32>
    %177 = arith.minimumf %173, %176 : vector<4x128xf32>
    %178 = math.exp %177 : vector<4x128xf32>
    %cst_96 = arith.constant 1.000000e+00 : f32
    %179 = vector.broadcast %cst_96 : f32 to vector<4x128xf32>
    %180 = arith.subf %178, %179 : vector<4x128xf32>
    %181 = arith.select %175, %173, %180 : vector<4x128xi1>, vector<4x128xf32>
    %c4_97 = arith.constant 4 : index
    %c0_98 = arith.constant 0 : index
    %c0_99 = arith.constant 0 : index
    %182 = vector.load %arg14[%c4_97, %c0_98, %c0_99] : memref<6x128x256xf32, #tpu.memory_space<vmem>>, vector<1x128x256xf32>
    %183 = vector.shape_cast %182 : vector<1x128x256xf32> to vector<128x256xf32>
    %cst_100 = arith.constant dense<0.000000e+00> : vector<4x256xf32>
    %184 = tpu.matmul %181, %183, %cst_100 {dimension_numbers = #tpu.dot_dimension_numbers<[1], [0], [0], [1], [0, 0, 1, 1], [], []>} : vector<4x128xf32>, vector<128x256xf32>, vector<4x256xf32> -> vector<4x256xf32>
    %c4_101 = arith.constant 4 : index
    %c0_102 = arith.constant 0 : index
    %c0_103 = arith.constant 0 : index
    %185 = vector.load %arg15[%c4_101, %c0_102, %c0_103] : memref<6x1x256xf32, #tpu.memory_space<vmem>>, vector<1x1x256xf32>
    %186 = vector.shape_cast %185 : vector<1x1x256xf32> to vector<1x256xf32>
    %187 = vector.broadcast %186 : vector<1x256xf32> to vector<4x256xf32>
    %188 = arith.addf %184, %187 : vector<4x256xf32>
    %189 = vector.extract_strided_slice %188 {offsets = [0, 0], sizes = [4, 128], strides = [1, 1]} : vector<4x256xf32> to vector<4x128xf32>
    %190 = math.tanh %189 : vector<4x128xf32>
    %191 = math.exp %190 : vector<4x128xf32>
    %192 = arith.mulf %136, %191 : vector<4x128xf32>
    %193 = vector.extract_strided_slice %188 {offsets = [0, 128], sizes = [4, 128], strides = [1, 1]} : vector<4x256xf32> to vector<4x128xf32>
    %194 = arith.addf %192, %193 : vector<4x128xf32>
    %195 = vector.extract_strided_slice %45 {offsets = [0, 640], sizes = [4, 128], strides = [1, 1]} : vector<4x768xf32> to vector<4x128xf32>
    %c5 = arith.constant 5 : index
    %c0_104 = arith.constant 0 : index
    %c0_105 = arith.constant 0 : index
    %196 = vector.load %arg13[%c5, %c0_104, %c0_105] : memref<6x128x128xf32, #tpu.memory_space<vmem>>, vector<1x128x128xf32>
    %197 = vector.shape_cast %196 : vector<1x128x128xf32> to vector<128x128xf32>
    %cst_106 = arith.constant dense<0.000000e+00> : vector<4x128xf32>
    %198 = tpu.matmul %194, %197, %cst_106 {dimension_numbers = #tpu.dot_dimension_numbers<[1], [0], [0], [1], [0, 0, 1, 1], [], []>} : vector<4x128xf32>, vector<128x128xf32>, vector<4x128xf32> -> vector<4x128xf32>
    %199 = arith.addf %195, %198 : vector<4x128xf32>
    %cst_107 = arith.constant 0.000000e+00 : f32
    %200 = vector.broadcast %cst_107 : f32 to vector<4x128xf32>
    %201 = arith.cmpf ogt, %199, %200 : vector<4x128xf32>
    %cst_108 = arith.constant 0.000000e+00 : f32
    %202 = vector.broadcast %cst_108 : f32 to vector<4x128xf32>
    %203 = arith.minimumf %199, %202 : vector<4x128xf32>
    %204 = math.exp %203 : vector<4x128xf32>
    %cst_109 = arith.constant 1.000000e+00 : f32
    %205 = vector.broadcast %cst_109 : f32 to vector<4x128xf32>
    %206 = arith.subf %204, %205 : vector<4x128xf32>
    %207 = arith.select %201, %199, %206 : vector<4x128xi1>, vector<4x128xf32>
    %c5_110 = arith.constant 5 : index
    %c0_111 = arith.constant 0 : index
    %c0_112 = arith.constant 0 : index
    %208 = vector.load %arg14[%c5_110, %c0_111, %c0_112] : memref<6x128x256xf32, #tpu.memory_space<vmem>>, vector<1x128x256xf32>
    %209 = vector.shape_cast %208 : vector<1x128x256xf32> to vector<128x256xf32>
    %cst_113 = arith.constant dense<0.000000e+00> : vector<4x256xf32>
    %210 = tpu.matmul %207, %209, %cst_113 {dimension_numbers = #tpu.dot_dimension_numbers<[1], [0], [0], [1], [0, 0, 1, 1], [], []>} : vector<4x128xf32>, vector<128x256xf32>, vector<4x256xf32> -> vector<4x256xf32>
    %c5_114 = arith.constant 5 : index
    %c0_115 = arith.constant 0 : index
    %c0_116 = arith.constant 0 : index
    %211 = vector.load %arg15[%c5_114, %c0_115, %c0_116] : memref<6x1x256xf32, #tpu.memory_space<vmem>>, vector<1x1x256xf32>
    %212 = vector.shape_cast %211 : vector<1x1x256xf32> to vector<1x256xf32>
    %213 = vector.broadcast %212 : vector<1x256xf32> to vector<4x256xf32>
    %214 = arith.addf %210, %213 : vector<4x256xf32>
    %215 = vector.extract_strided_slice %214 {offsets = [0, 0], sizes = [4, 128], strides = [1, 1]} : vector<4x256xf32> to vector<4x128xf32>
    %216 = math.tanh %215 : vector<4x128xf32>
    %217 = math.exp %216 : vector<4x128xf32>
    %218 = arith.mulf %162, %217 : vector<4x128xf32>
    %219 = vector.extract_strided_slice %214 {offsets = [0, 128], sizes = [4, 128], strides = [1, 1]} : vector<4x256xf32> to vector<4x128xf32>
    %220 = arith.addf %218, %219 : vector<4x128xf32>
    %cst_117 = arith.constant dense<0.000000e+00> : vector<4xf32>
    %221 = vector.multi_reduction <add>, %190, %cst_117 [1] : vector<4x128xf32> to vector<4xf32>
    %222 = vector.shape_cast %221 : vector<4xf32> to vector<4x1xf32>
    %223 = arith.addf %168, %222 : vector<4x1xf32>
    %cst_118 = arith.constant dense<0.000000e+00> : vector<4xf32>
    %224 = vector.multi_reduction <add>, %216, %cst_118 [1] : vector<4x128xf32> to vector<4xf32>
    %225 = vector.shape_cast %224 : vector<4xf32> to vector<4x1xf32>
    %226 = arith.addf %223, %225 : vector<4x1xf32>
    %c0_119 = arith.constant 0 : index
    %c0_120 = arith.constant 0 : index
    %227 = vector.load %arg16[%c0_119, %c0_120] : memref<4x128xf32, #tpu.memory_space<vmem>>, vector<4x128xf32>
    tpu.vector_store %arg16[%c0_119, %c0_120], %194 {strides = array<i32>} : memref<4x128xf32, #tpu.memory_space<vmem>>, vector<4x128xf32>,
    %c0_121 = arith.constant 0 : index
    %c0_122 = arith.constant 0 : index
    %228 = vector.load %arg17[%c0_121, %c0_122] : memref<4x128xf32, #tpu.memory_space<vmem>>, vector<4x128xf32>
    tpu.vector_store %arg17[%c0_121, %c0_122], %220 {strides = array<i32>} : memref<4x128xf32, #tpu.memory_space<vmem>>, vector<4x128xf32>,
    %c0_123 = arith.constant 0 : index
    %c0_124 = arith.constant 0 : index
    %229 = vector.load %arg18[%c0_123, %c0_124] : memref<4x1xf32, #tpu.memory_space<vmem>>, vector<4x1xf32>
    tpu.vector_store %arg18[%c0_123, %c0_124], %226 {strides = array<i32>} : memref<4x1xf32, #tpu.memory_space<vmem>>, vector<4x1xf32>,
    return
  }
  func.func @transform_0(%arg0: i32) -> (i32, i32) {
    %c0_i32 = arith.constant 0 : i32
    %c0_i32_0 = arith.constant 0 : i32
    return %arg0, %c0_i32 : i32, i32
  }
  func.func @transform_1(%arg0: i32) -> (i32, i32) {
    %c0_i32 = arith.constant 0 : i32
    %c0_i32_0 = arith.constant 0 : i32
    return %arg0, %c0_i32 : i32, i32
  }
  func.func @transform_2(%arg0: i32) -> (i32, i32) {
    %c0_i32 = arith.constant 0 : i32
    %c0_i32_0 = arith.constant 0 : i32
    %c0_i32_1 = arith.constant 0 : i32
    return %c0_i32, %c0_i32_0 : i32, i32
  }
  func.func @transform_3(%arg0: i32) -> (i32, i32) {
    %c0_i32 = arith.constant 0 : i32
    %c0_i32_0 = arith.constant 0 : i32
    %c0_i32_1 = arith.constant 0 : i32
    return %c0_i32, %c0_i32_0 : i32, i32
  }
  func.func @transform_4(%arg0: i32) -> (i32, i32) {
    %c0_i32 = arith.constant 0 : i32
    %c0_i32_0 = arith.constant 0 : i32
    %c0_i32_1 = arith.constant 0 : i32
    return %c0_i32, %c0_i32_0 : i32, i32
  }
  func.func @transform_5(%arg0: i32) -> (i32, i32) {
    %c0_i32 = arith.constant 0 : i32
    %c0_i32_0 = arith.constant 0 : i32
    %c0_i32_1 = arith.constant 0 : i32
    return %c0_i32, %c0_i32_0 : i32, i32
  }
  func.func @transform_6(%arg0: i32) -> (i32, i32) {
    %c0_i32 = arith.constant 0 : i32
    %c0_i32_0 = arith.constant 0 : i32
    %c0_i32_1 = arith.constant 0 : i32
    return %c0_i32, %c0_i32_0 : i32, i32
  }
  func.func @transform_7(%arg0: i32) -> (i32, i32) {
    %c0_i32 = arith.constant 0 : i32
    %c0_i32_0 = arith.constant 0 : i32
    %c0_i32_1 = arith.constant 0 : i32
    return %c0_i32, %c0_i32_0 : i32, i32
  }
  func.func @transform_8(%arg0: i32) -> (i32, i32) {
    %c0_i32 = arith.constant 0 : i32
    %c0_i32_0 = arith.constant 0 : i32
    %c0_i32_1 = arith.constant 0 : i32
    return %c0_i32, %c0_i32_0 : i32, i32
  }
  func.func @transform_9(%arg0: i32) -> (i32, i32) {
    %c0_i32 = arith.constant 0 : i32
    %c0_i32_0 = arith.constant 0 : i32
    %c0_i32_1 = arith.constant 0 : i32
    return %c0_i32, %c0_i32_0 : i32, i32
  }
  func.func @transform_10(%arg0: i32) -> (i32, i32) {
    %c0_i32 = arith.constant 0 : i32
    %c0_i32_0 = arith.constant 0 : i32
    %c0_i32_1 = arith.constant 0 : i32
    return %c0_i32, %c0_i32_0 : i32, i32
  }
  func.func @transform_11(%arg0: i32) -> (i32, i32) {
    %c0_i32 = arith.constant 0 : i32
    %c0_i32_0 = arith.constant 0 : i32
    %c0_i32_1 = arith.constant 0 : i32
    return %c0_i32, %c0_i32_0 : i32, i32
  }
  func.func @transform_12(%arg0: i32) -> (i32, i32, i32) {
    %c0_i32 = arith.constant 0 : i32
    %c0_i32_0 = arith.constant 0 : i32
    %c0_i32_1 = arith.constant 0 : i32
    %c0_i32_2 = arith.constant 0 : i32
    return %c0_i32, %c0_i32_0, %c0_i32_1 : i32, i32, i32
  }
  func.func @transform_13(%arg0: i32) -> (i32, i32, i32) {
    %c0_i32 = arith.constant 0 : i32
    %c0_i32_0 = arith.constant 0 : i32
    %c0_i32_1 = arith.constant 0 : i32
    %c0_i32_2 = arith.constant 0 : i32
    return %c0_i32, %c0_i32_0, %c0_i32_1 : i32, i32, i32
  }
  func.func @transform_14(%arg0: i32) -> (i32, i32, i32) {
    %c0_i32 = arith.constant 0 : i32
    %c0_i32_0 = arith.constant 0 : i32
    %c0_i32_1 = arith.constant 0 : i32
    %c0_i32_2 = arith.constant 0 : i32
    return %c0_i32, %c0_i32_0, %c0_i32_1 : i32, i32, i32
  }
  func.func @transform_15(%arg0: i32) -> (i32, i32) {
    %c0_i32 = arith.constant 0 : i32
    %c0_i32_0 = arith.constant 0 : i32
    return %arg0, %c0_i32 : i32, i32
  }
  func.func @transform_16(%arg0: i32) -> (i32, i32) {
    %c0_i32 = arith.constant 0 : i32
    %c0_i32_0 = arith.constant 0 : i32
    return %arg0, %c0_i32 : i32, i32
  }
  func.func @transform_17(%arg0: i32) -> (i32, i32) {
    %c0_i32 = arith.constant 0 : i32
    %c0_i32_0 = arith.constant 0 : i32
    return %arg0, %c0_i32 : i32, i32
  }
}

</mosaic_0001>

<bundles_post_ra>
// kernel: cinn_forward.1
= control target key start
LH: loop header
LB: loop body
LE: loop exit
PB: predicated region body
PF: predicated region fallthrough
CT: control target
= control target key end

     0   :  { %s2025_s0 = inlined_call_operand.vmem [shape: f32[32,3], index: 0, kind: input, shape index: {}]   ;;  %s2026_s1 = inlined_call_operand.vmem [shape: f32[4,8], index: 1, kind: input, shape index: {}]   ;;  %s2027_s2 = inlined_call_operand.vmem [shape: f32[3,64], index: 2, kind: input, shape index: {}]   ;;  %s2028_s3 = inlined_call_operand.vmem [shape: f32[1,64], index: 3, kind: input, shape index: {}]   ;;  %s2029_s4 = inlined_call_operand.vmem [shape: f32[64,256], index: 4, kind: input, shape index: {}]   ;;  %s2030_s5 = inlined_call_operand.vmem [shape: f32[1,256], index: 5, kind: input, shape index: {}]   ;;  %s2031_s6 = inlined_call_operand.vmem [shape: f32[128,32], index: 6, kind: input, shape index: {}]   ;;  %s2032_s7 = inlined_call_operand.vmem [shape: f32[1,32], index: 7, kind: input, shape index: {}]   ;;  %s2033_s8 = inlined_call_operand.vmem [shape: f32[32,6], index: 8, kind: input, shape index: {}]   ;;  %s2034_s9 = inlined_call_operand.vmem [shape: f32[1,6], index: 9, kind: input, shape index: {}]   ;;  %s2035_s10 = inlined_call_operand.vmem [shape: f32[6,768], index: 10, kind: input, shape index: {}]   ;;  %s2036_s11 = inlined_call_operand.vmem [shape: f32[1,768], index: 11, kind: input, shape index: {}]   ;;  %s2037_s12 = inlined_call_operand.hbm [shape: f32[6,128,128], index: 12, kind: input, shape index: {}]   ;;  %s2038_s13 = inlined_call_operand.hbm [shape: f32[6,128,256], index: 13, kind: input, shape index: {}]   ;;  %s2039_s14 = inlined_call_operand.vmem [shape: f32[6,1,256], index: 14, kind: input, shape index: {}]   ;;  %s2040_s15 = inlined_call_operand.vmem [shape: f32[4,128], index: 15, kind: output, shape index: {0}]   ;;  %s2041_s16 = inlined_call_operand.vmem [shape: f32[4,128], index: 16, kind: output, shape index: {1}]   ;;  %s2042_s17 = inlined_call_operand.vmem [shape: f32[4,1], index: 17, kind: output, shape index: {2}]  }
   0x1   :  { %2044 = sst [smem:[#allocation8_spill]] %s2025_s0 }
   0x2   :  { %2045 = sst [smem:[#allocation9_spill]] %s2026_s1 }
   0x3   :  { %23 = vsyncpa [#allocation3], 0  ;;  %s53_s26 = sshll.u32 %s2037_s12, 4  ;;  %s54_s26 = int_to_ptr.hbm [resolvable:$true] %s53_s26 }
   0x4   :  { %24 = vsyncpa [#allocation5], 0  ;;  %s1607_s27 = smov [#allocation2]   ;;  %s66_s30 = sshll.u32 %s2038_s13, 4  ;;  %s67_s30 = int_to_ptr.hbm [resolvable:$true] %s66_s30 }
   0x5   :  { %s55_s28 = sshll.u32 %s1607_s27, 4  ;;  %s1608_s18 = smov 128   ;;  %s56_s28 = int_to_ptr.vmem [resolvable:$true] %s55_s28 }
   0x6   :  { %s1609_s19 = smov 8   ;;  %s1610_s1 = smov [#allocation4]  }
   0x7   :  { %61 = dma.hbm_to_vmem [thread:$0]  %s54_s26, 12288, %s56_s28, [#allocation3], %s1608_s18, %s1608_s18, %s1609_s19  }
   0x8   :  { %s68_s20 = sshll.u32 %s1610_s1, 4  ;;  %s1611_s21 = smov 256   ;;  %s69_s20 = int_to_ptr.vmem [resolvable:$true] %s68_s20 }
   0x9   :  { %s1612_s22 = smov 16  }
   0xa   :  { %74 = dma.hbm_to_vmem [thread:$0]  %s67_s30, 24576, %s69_s20, [#allocation5], %s1611_s21, %s1611_s21, %s1612_s22  }
   0xb   :  { %1603 = dma.done.wait [#allocation3], 12288  }
   0xc   :  { %1604 = vsyncadd [#allocation3], 4294955008 }
   0xd   :  { %1605 = dma.done.wait [#allocation5], 24576  }
   0xe   :  { %1606 = vsyncadd [#allocation5], 4294942720  ;;  %vm107_vm0 = vcmask 1042432   ;;  %vm94_vm1 = vcmask 23552   ;;  %v89_v0 = vld [vmem:[%s2027_s2] sm:$0x7] }
   0xf   :  { %s2046_s25 = sld [smem:[#allocation8_spill]]  ;;  %1454 = vmatpush.msk.msra.mxu0 %vm107_vm0, %v89_v0  ;;  %v158_v2 = vld [vmem:[%s2029_s4 + $0x70] sm:$0xff]  ;;  %v159_v3 = vld [vmem:[%s2029_s4 + $0x78] sm:$0xff]  ;;  %v156_v4 = vld [vmem:[%s2029_s4 + $0x60] sm:$0xff]  ;;  %vm166_vm2 = vcmask 523264  }
  0x10   :  { %187 = vmatpush.msra.mxu1 %v158_v2  ;;  %v157_v5 = vld [vmem:[%s2029_s4 + $0x68] sm:$0xff]  ;;  %216 = vmatpush.msra.mxu2 %v159_v3  ;;  %v154_v6 = vld [vmem:[%s2029_s4 + $0x50] sm:$0xff]  ;;  %v155_v7 = vld [vmem:[%s2029_s4 + $0x58] sm:$0xff] }
  0x11   :  { %v152_v8 = vld [vmem:[%s2029_s4 + $0x40] sm:$0xff]  ;;  %v153_v9 = vld [vmem:[%s2029_s4 + $0x48] sm:$0xff]  ;;  %v150_v11 = vld [vmem:[%s2029_s4 + $0x30] sm:$0xff] }
  0x12   :  { %188 = vmatpush.msra.mxu1 %v156_v4  ;;  %217 = vmatpush.msra.mxu2 %v157_v5  ;;  %v151_v12 = vld [vmem:[%s2029_s4 + $0x38] sm:$0xff]  ;;  %v148_v15 = vld [vmem:[%s2029_s4 + $0x20] sm:$0xff]  ;;  %v149_v16 = vld [vmem:[%s2029_s4 + $0x28] sm:$0xff] }
  0x13   :  { %v146_v17 = vld [vmem:[%s2029_s4 + $0x10] sm:$0xff]  ;;  %v147_v18 = vld [vmem:[%s2029_s4 + $0x18] sm:$0xff]  ;;  %v144_v19 = vld [vmem:[%s2029_s4] sm:$0xff] }
  0x14   :  { %189 = vmatpush.msra.mxu1 %v154_v6  ;;  %218 = vmatpush.msra.mxu2 %v155_v7  ;;  %v145_v20 = vld [vmem:[%s2029_s4 + $0x8] sm:$0xff]  ;;  %v1499_v21 = vld [vmem:[%s2028_s3] ss:$0 sm:$0xff]  ;;  %s2049_s3 = sld [smem:[#allocation9_spill]]  ;;  %s1613_s4 = smov 124  }
  0x15   :  { %v85_v1 = vld [vmem:[%s2046_s25] sm:$0xff]  ;;  %v86_v10 = vld [vmem:[%s2046_s25 + $0x8] sm:$0xff]  ;;  %v87_v13 = vld [vmem:[%s2046_s25 + $0x10] sm:$0xff] }
  0x16   :  { %1455 = vmatmul.msk.f32.vlgmr.msra.gmra.mxu0 %vm94_vm1, %v85_v1  ;;  %190 = vmatpush.msra.mxu1 %v152_v8  ;;  %v88_v14 = vld [vmem:[%s2046_s25 + $0x18] sm:$0xff]  ;;  %v1791_v34 = vld [vmem:[%s2030_s5] sm:$0x3] }
  0x17   :  { %219 = vmatpush.msra.mxu2 %v153_v9  ;;  %v163_v35 = vperm.slane %v1791_v34, 1  ;;  %v400_v8 = vld [vmem:[%s2031_s6 + $0x78] sm:$0xff]  ;;  %v399_v9 = vld [vmem:[%s2031_s6 + $0x70] sm:$0xff] }
  0x18   :  { %191 = vmatpush.msra.mxu1 %v150_v11  ;;  %416 = vmatpush.msra.mxu3 %v400_v8 }
  0x19   :  { %220 = vmatpush.msra.mxu2 %v151_v12 }
  0x1a   :  { %192 = vmatpush.msra.mxu1 %v148_v15  ;;  %417 = vmatpush.msra.mxu3 %v399_v9  ;;  %v385_v9 = vld [vmem:[%s2031_s6] sm:$0xff] }
  0x1b   :  { %221 = vmatpush.msra.mxu2 %v149_v16 }
  0x1c   :  { %193 = vmatpush.msra.mxu1 %v146_v17 }
  0x1d   :  { %222 = vmatpush.msra.mxu2 %v147_v18 }
  0x1e   :  { %1456 = vmatmul.msk.f32.gmra.mxu0 %vm94_vm1, %v86_v10  ;;  %194 = vmatpush.msra.mxu1 %v144_v19  ;;  %v397_v19 = vld [vmem:[%s2031_s6 + $0x60] sm:$0xff] }
  0x1f   :  { %223 = vmatpush.msra.mxu2 %v145_v20 }
  0x26   :  { %1457 = vmatmul.msk.f32.gmra.mxu0 %vm94_vm1, %v87_v13  ;;  %v398_v13 = vld [vmem:[%s2031_s6 + $0x68] sm:$0xff] }
  0x27   :  { %418 = vmatpush.msra.mxu3 %v398_v13  ;;  %v1877_v13 = vperm.slane %v1791_v34, 0 }
  0x29   :  { %419 = vmatpush.msra.mxu3 %v397_v19 }
  0x2e   :  { %1458 = vmatmul.msk.f32.gmra.mxu0 %vm94_vm1, %v88_v14 }
  0x93   :  { %v128_v22 = vpop.f32.mrf.mxu0 }
  0x94   :  { %v129_v23 = vadd.f32 %v1499_v21, %v128_v22 }
  0x96   :  { %v140_v24 = vmax.f32 %v129_v23, 0.0  ;;  %v396_v23 = vld [vmem:[%s2031_s6 + $0x58] sm:$0xff] }
  0x97   :  { %420 = vmatpush.msra.mxu3 %v396_v23 }
  0x98   :  { %1459 = vmatmul.msk.f32.vlgmr.msra.gmra.mxu1 %vm166_vm2, %v140_v24  ;;  %1463 = vmatmul.msk.f32.vlgmr.msra.gmra.mxu2 %vm166_vm2, %v140_v24 }
  0x9b   :  { %v131_v25 = vpop.f32.mrf.mxu0 }
  0x9c   :  { %v132_v26 = vadd.f32 %v1499_v21, %v131_v25 }
  0x9e   :  { %v141_v27 = vmax.f32 %v132_v26, 0.0  ;;  %v395_v26 = vld [vmem:[%s2031_s6 + $0x50] sm:$0xff] }
  0x9f   :  { %421 = vmatpush.msra.mxu3 %v395_v26  ;;  %v440_v26 = vld [vmem:[%s2033_s8 + $0x18] sm:$0xff] }
  0xa0   :  { %1460 = vmatmul.msk.f32.gmra.mxu1 %vm166_vm2, %v141_v27  ;;  %1464 = vmatmul.msk.f32.gmra.mxu2 %vm166_vm2, %v141_v27 }
  0xa1   :  { %461 = vmatpush.msrb.mxu0 %v440_v26  ;;  %v650_v26 = vld [vmem:[#allocation2 + $0x50] sm:$0xff] }
  0xa3   :  { %v134_v28 = vpop.f32.mrf.mxu0 }
  0xa4   :  { %v135_v29 = vadd.f32 %v1499_v21, %v134_v28 }
  0xa6   :  { %v142_v30 = vmax.f32 %v135_v29, 0.0  ;;  %v394_v29 = vld [vmem:[%s2031_s6 + $0x48] sm:$0xff] }
  0xa7   :  { %422 = vmatpush.msra.mxu3 %v394_v29 }
  0xa8   :  { %1461 = vmatmul.msk.f32.gmra.mxu1 %vm166_vm2, %v142_v30  ;;  %1465 = vmatmul.msk.f32.gmra.mxu2 %vm166_vm2, %v142_v30 }
  0xab   :  { %v137_v31 = vpop.f32.mrf.mxu0 }
  0xac   :  { %v138_v32 = vadd.f32 %v1499_v21, %v137_v31 }
  0xae   :  { %v143_v33 = vmax.f32 %v138_v32, 0.0 }
  0xb0   :  { %1462 = vmatmul.msk.f32.gmra.mxu1 %vm166_vm2, %v143_v33  ;;  %1466 = vmatmul.msk.f32.gmra.mxu2 %vm166_vm2, %v143_v33 }
 0x11b   :  { %v225_v36 = vpop.f32.mrf.mxu2 }
 0x11c   :  { %v226_v37 = vadd.f32 %v225_v36, %v163_v35 }
 0x11e   :  { %v237_v38 = vrot.slane %v226_v37, 4 }
 0x120   :  { %v238_v39 = vmax.f32 %v226_v37, %v237_v38 }
 0x122   :  { %v239_v40 = vrot.slane %v238_v39, 2 }
 0x123   :  { %v228_v41 = vpop.f32.mrf.mxu2 }
 0x124   :  { %v240_v42 = vmax.f32 %v238_v39, %v239_v40  ;;  %v229_v43 = vadd.f32 %v228_v41, %v163_v35  ;;  %v392_v39 = vld [vmem:[%s2031_s6 + $0x38] sm:$0xff]  ;;  %v1837_v41 = vpop.f32.mrf.mxu1 }
 0x125   :  { %v197_v34 = vadd.f32 %v1837_v41, %v1877_v13 }
 0x126   :  { %v241_v44 = vrot.slane %v240_v42, 1  ;;  %v243_v45 = vrot.slane %v229_v43, 4 }
 0x128   :  { %v242_v46 = vmax.f32 %v240_v42, %v241_v44  ;;  %v244_v47 = vmax.f32 %v229_v43, %v243_v45 }
 0x12a   :  { %v261_v48 = vsub.f32 %v226_v37, %v242_v46  ;;  %v245_v49 = vrot.slane %v244_v47, 2  ;;  %v390_v46 = vld [vmem:[%s2031_s6 + $0x28] sm:$0xff] }
 0x12b   :  { %v231_v50 = vpop.f32.mrf.mxu2 }
 0x12c   :  { %v265_v51 = vmul.f32 1.442695, %v261_v48  ;;  %v246_v52 = vmax.f32 %v244_v47, %v245_v49  ;;  %v232_v53 = vadd.f32 %v231_v50, %v163_v35 }
 0x12e   :  { %1502 = vpow2.f32 %v265_v51  ;;  %v247_v54 = vrot.slane %v246_v52, 1  ;;  %v249_v55 = vrot.slane %v232_v53, 4  ;;  %v389_v51 = vld [vmem:[%s2031_s6 + $0x20] sm:$0xff] }
 0x130   :  { %v248_v56 = vmax.f32 %v246_v52, %v247_v54  ;;  %v250_v57 = vmax.f32 %v232_v53, %v249_v55  ;;  %v388_v55 = vld [vmem:[%s2031_s6 + $0x18] sm:$0xff] }
 0x132   :  { %v262_v58 = vsub.f32 %v229_v43, %v248_v56  ;;  %v251_v59 = vrot.slane %v250_v57, 2  ;;  %v391_v43 = vld [vmem:[%s2031_s6 + $0x30] sm:$0xff] }
 0x133   :  { %v234_v60 = vpop.f32.mrf.mxu2 }
 0x134   :  { %v1794_v61 = vpop.eup %1502  ;;  %v267_v62 = vmul.f32 1.442695, %v262_v58  ;;  %v252_v63 = vmax.f32 %v250_v57, %v251_v59  ;;  %v235_v0 = vadd.f32 %v234_v60, %v163_v35  ;;  %v393_v35 = vld [vmem:[%s2031_s6 + $0x40] sm:$0xff]  ;;  %v387_v59 = vld [vmem:[%s2031_s6 + $0x10] sm:$0xff] }
 0x135   :  { %v273_v1 = vrot.slane %v1794_v61, 4  ;;  %423 = vmatpush.msra.mxu3 %v393_v35 }
 0x136   :  { %1504 = vpow2.f32 %v267_v62  ;;  %v253_v2 = vrot.slane %v252_v63, 1  ;;  %v255_v3 = vrot.slane %v235_v0, 4 }
 0x137   :  { %v274_v4 = vadd.f32 %v1794_v61, %v273_v1  ;;  %424 = vmatpush.msra.mxu3 %v392_v39 }
 0x138   :  { %v254_v5 = vmax.f32 %v252_v63, %v253_v2  ;;  %v256_v6 = vmax.f32 %v235_v0, %v255_v3  ;;  %v386_v2 = vld [vmem:[%s2031_s6 + $0x8] sm:$0xff] }
 0x139   :  { %v275_v7 = vrot.slane %v274_v4, 2  ;;  %425 = vmatpush.msra.mxu3 %v391_v43 }
 0x13a   :  { %v263_v10 = vsub.f32 %v232_v53, %v254_v5  ;;  %v257_v11 = vrot.slane %v256_v6, 2 }
 0x13b   :  { %v276_v12 = vadd.f32 %v275_v7, %v274_v4  ;;  %426 = vmatpush.msra.mxu3 %v390_v46 }
 0x13c   :  { %v1807_v14 = vpop.eup %1504  ;;  %v269_v15 = vmul.f32 1.442695, %v263_v10  ;;  %v258_v16 = vmax.f32 %v256_v6, %v257_v11 }
 0x13d   :  { %v277_v17 = vrot.slane %v276_v12, 1  ;;  %v279_v18 = vrot.slane %v1807_v14, 4  ;;  %427 = vmatpush.msra.mxu3 %v389_v51 }
 0x13e   :  { %1506 = vpow2.f32 %v269_v15  ;;  %v259_v20 = vrot.slane %v258_v16, 1 }
 0x13f   :  { %v1813_v21 = vadd.f32 %v277_v17, %v276_v12  ;;  %v280_v22 = vadd.f32 %v1807_v14, %v279_v18  ;;  %428 = vmatpush.msra.mxu3 %v388_v55 }
 0x140   :  { %v260_v24 = vmax.f32 %v258_v16, %v259_v20 }
 0x141   :  { %1508 = vrcp.f32 %v1813_v21  ;;  %v281_v25 = vrot.slane %v280_v22, 2  ;;  %v308_v60 = vand.u32 2147483648, %v1813_v21  ;;  %vm302_vm4 = vweird.f32 %v1813_v21  ;;  %429 = vmatpush.msra.mxu3 %v387_v59 }
 0x142   :  { %v264_v27 = vsub.f32 %v235_v0, %v260_v24  ;;  %v306_v62 = vand.u32 2147483647, %v1813_v21  ;;  %v199_v0 = vpop.f32.mrf.mxu1 }
 0x143   :  { %v282_v28 = vadd.f32 %v281_v25, %v280_v22  ;;  %v309_v10 = vor.u32 1.1754944e-38, %v308_v60  ;;  %430 = vmatpush.msra.mxu3 %v386_v2 }
 0x144   :  { %v1826_v30 = vpop.eup %1506  ;;  %v271_v31 = vmul.f32 1.442695, %v264_v27  ;;  %vm307_vm7 = vcmp.eq.f32.partialorder %v306_v62, 8.507059e+37  ;;  %v439_v27 = vld [vmem:[%s2033_s8 + $0x10] sm:$0xff] }
 0x145   :  { %v283_v32 = vrot.slane %v282_v28, 1  ;;  %v285_v33 = vrot.slane %v1826_v30, 4  ;;  %431 = vmatpush.msra.mxu3 %v385_v9  ;;  %462 = vmatpush.msrb.mxu0 %v439_v27  ;;  %v649_v27 = vld [vmem:[#allocation2 + $0x48] sm:$0xff] }
 0x146   :  { %1510 = vpow2.f32 %v271_v31  ;;  %v438_v31 = vld [vmem:[%s2033_s8 + $0x8] sm:$0xff] }
 0x147   :  { %v1509_v36 = vpop.eup %1508  ;;  %v284_v37 = vadd.f32 %v283_v32, %v282_v28  ;;  %v286_v38 = vadd.f32 %v1826_v30, %v285_v33  ;;  %463 = vmatpush.msrb.mxu0 %v438_v31  ;;  %v1500_v31 = vld [vmem:[%s2032_s7] ss:$0 sm:$0xff] }
 0x148   :  { %v298_v40 = vmul.f32 %v1509_v36, %v1813_v21  ;;  %vm303_vm3 = vweird.f32 %v1509_v36  ;;  %v200_v21 = vadd.f32 %v199_v0, %v1877_v13 }
 0x149   :  { %1512 = vrcp.f32 %v284_v37  ;;  %v287_v42 = vrot.slane %v286_v38, 2  ;;  %vm1867_vm5 = vmor %vm302_vm4, %vm303_vm3  ;;  %v322_v4 = vand.u32 2147483648, %v284_v37  ;;  %v320_v7 = vand.u32 2147483647, %v284_v37 }
 0x14a   :  { %v299_v44 = vsub.f32 1.0, %v298_v40  ;;  %vm316_vm8 = vweird.f32 %v284_v37  ;;  %vm409_vm3 = vcmask 1041409   ;;  %vm411_vm4 = vcmask 1042434  }
 0x14b   :  { %v288_v45 = vadd.f32 %v287_v42, %v286_v38  ;;  %v323_v17 = vor.u32 1.1754944e-38, %v322_v4  ;;  %vm321_vm10 = vcmp.eq.f32.partialorder %v320_v7, 8.507059e+37 }
 0x14c   :  { %v1845_v47 = vpop.eup %1510  ;;  %v300_v48 = vmul.f32 %v1509_v36, %v299_v44 }
 0x14d   :  { %v289_v49 = vrot.slane %v288_v45, 1  ;;  %v291_v50 = vrot.slane %v1845_v47, 4 }
 0x14e   :  { %v301_v56 = vadd.f32 %v1509_v36, %v300_v48 }
 0x14f   :  { %v1513_v52 = vpop.eup %1512  ;;  %v1851_v53 = vadd.f32 %v289_v49, %v288_v45  ;;  %v292_v54 = vadd.f32 %v1845_v47, %v291_v50 }
 0x150   :  { %v312_v57 = vmul.f32 %v1513_v52, %v284_v37  ;;  %v305_v5 = vsel %vm1867_vm5, %v1509_v36, %v301_v56  ;;  %vm317_vm6 = vweird.f32 %v1513_v52  ;;  %v437_v37 = vld [vmem:[%s2033_s8] sm:$0xff]  ;;  %vm413_vm5 = vcmask 1043459  }
 0x151   :  { %1514 = vrcp.f32 %v1851_v53  ;;  %v293_v58 = vrot.slane %v292_v54, 2  ;;  %v310_v16 = vsel %vm307_vm7, %v309_v10, %v305_v5  ;;  %vm318_vm9 = vmor %vm316_vm8, %vm317_vm6  ;;  %v336_v25 = vand.u32 2147483648, %v1851_v53  ;;  %464 = vmatpush.msrb.mxu0 %v437_v37  ;;  %v470_v37 = vld [vmem:[%s2035_s10 + $0x8] sm:$0x3f] }
 0x152   :  { %v313_v63 = vsub.f32 1.0, %v312_v57  ;;  %v353_v23 = vmul.f32 %v1794_v61, %v310_v16  ;;  %v334_v29 = vand.u32 2147483647, %v1851_v53  ;;  %vm330_vm12 = vweird.f32 %v1851_v53 }
 0x153   :  { %v294_v1 = vadd.f32 %v293_v58, %v292_v54  ;;  %v337_v36 = vor.u32 1.1754944e-38, %v336_v25  ;;  %vm493_vm6 = vcmask 1045504   ;;  %v651_v25 = vld [vmem:[#allocation2 + $0x58] sm:$0xff]  ;;  %vm445_vm7 = vcmask 261120  }
 0x154   :  { %v314_v6 = vmul.f32 %v1513_v52, %v313_v63  ;;  %v357_v33 = vmul.f32 %v353_v23, %v197_v34  ;;  %vm335_vm14 = vcmp.eq.f32.partialorder %v334_v29, 8.507059e+37  ;;  %v653_v23 = vld [vmem:[#allocation2 + $0x68] sm:$0xff]  ;;  %v652_v34 = vld [vmem:[#allocation2 + $0x60] sm:$0xff]  ;;  %v647_v29 = vld [vmem:[#allocation2 + $0x38] sm:$0xff]  ;;  %1470 = vmatpush.msk.msra.mxu0 %vm493_vm6, %v470_v37  ;;  %vm633_vm8 = vcmask 31744  }
 0x155   :  { %v295_v8 = vrot.slane %v294_v1, 1  ;;  %v775_v37 = vld [vmem:[#allocation2 + $0xc0] sm:$0xff] }
 0x156   :  { %v315_v11 = vadd.f32 %v1513_v52, %v314_v6  ;;  %v361_v45 = vrot.slane %v357_v33, 4 }
 0x157   :  { %v1515_v12 = vpop.eup %1514  ;;  %v296_v15 = vadd.f32 %v295_v8, %v294_v1 }
 0x158   :  { %v319_v18 = vsel %vm318_vm9, %v1513_v52, %v315_v11  ;;  %v326_v19 = vmul.f32 %v1515_v12, %v1851_v53  ;;  %vm331_vm11 = vweird.f32 %v1515_v12  ;;  %v362_v53 = vadd.f32 %v361_v45, %v357_v33 }
 0x159   :  { %1516 = vrcp.f32 %v296_v15  ;;  %v324_v20 = vsel %vm321_vm10, %v323_v17, %v319_v18  ;;  %vm332_vm13 = vmor %vm330_vm12, %vm331_vm11  ;;  %v348_v46 = vand.u32 2147483647, %v296_v15  ;;  %v350_v48 = vand.u32 2147483648, %v296_v15 }
 0x15a   :  { %v327_v22 = vsub.f32 1.0, %v326_v19  ;;  %v354_v24 = vmul.f32 %v1807_v14, %v324_v20  ;;  %v202_v14 = vpop.f32.mrf.mxu1  ;;  %vm344_vm0 = vweird.f32 %v296_v15  ;;  %v363_v63 = vrot.slane %v362_v53, 2  ;;  %v1907_v20 = vld [vmem:[%s2049_s3] sm:$0xf] }
 0x15b   :  { %v203_v42 = vadd.f32 %v202_v14, %v1877_v13  ;;  %v351_v56 = vor.u32 1.1754944e-38, %v350_v48  ;;  %vm349_vm2 = vcmp.eq.f32.partialorder %v348_v46, 8.507059e+37  ;;  %636 = vrot.lane.b32.xlu0 %v1907_v20, %s1613_s4  ;;  %v645_v14 = vld [vmem:[#allocation2 + $0x28] sm:$0xff]  ;;  %v713_v46 = vld [vmem:[#allocation4 + $0xf0] sm:$0xff]  ;;  %v711_v48 = vld [vmem:[#allocation4 + $0xe0] sm:$0xff]  ;;  %vm489_vm9 = vcmask 48128  }
 0x15c   :  { %v328_v28 = vmul.f32 %v1515_v12, %v327_v22  ;;  %v358_v61 = vmul.f32 %v354_v24, %v200_v21  ;;  %v364_v4 = vadd.f32 %v363_v63, %v362_v53  ;;  %v655_v21 = vld [vmem:[#allocation2 + $0x78] sm:$0xff]  ;;  %v654_v22 = vld [vmem:[#allocation2 + $0x70] sm:$0xff]  ;;  %v469_v24 = vld [vmem:[%s2035_s10] sm:$0x3f]  ;;  %vm895_vm11 = vcmask 1043456  }
 0x15d   :  { %656 = vmatpush.msrb.mxu1 %v655_v21  ;;  %1468 = vmatpush.msk.msrb.mxu3 %vm493_vm6, %v469_v24  ;;  %v473_v53 = vld [vmem:[%s2035_s10 + $0x20] sm:$0x3f]  ;;  %v701_v63 = vld [vmem:[#allocation4 + $0x90] sm:$0xff] }
 0x15e   :  { %v329_v32 = vadd.f32 %v1515_v12, %v328_v28  ;;  %v367_v40 = vrot.slane %v358_v61, 4  ;;  %v365_v9 = vrot.slane %v364_v4, 1  ;;  %v648_v28 = vld [vmem:[#allocation2 + $0x40] sm:$0xff]  ;;  %v781_v21 = vld [vmem:[#allocation2 + $0xf0] sm:$0xff] }
 0x15f   :  { %v1517_v35 = vpop.eup %1516  ;;  %657 = vmatpush.msrb.mxu1 %v654_v22  ;;  %v780_v22 = vld [vmem:[#allocation2 + $0xe8] sm:$0xff]  ;;  %v1947_v24 = vld [vmem:[%s2036_s11] sm:$0x3f] }
 0x160   :  { %v333_v38 = vsel %vm332_vm13, %v1515_v12, %v329_v32  ;;  %v340_v39 = vmul.f32 %v1517_v35, %v296_v15  ;;  %vm345_vm15 = vweird.f32 %v1517_v35  ;;  %v368_v51 = vadd.f32 %v367_v40, %v358_v61  ;;  %v646_v61 = vld [vmem:[#allocation2 + $0x30] sm:$0xff] }
 0x161   :  { %v338_v41 = vsel %vm335_vm14, %v337_v36, %v333_v38  ;;  %vm346_vm1 = vmor %vm344_vm0, %vm345_vm15  ;;  %v366_v16 = vadd.f32 %v365_v9, %v364_v4  ;;  %658 = vmatpush.msrb.mxu1 %v653_v23  ;;  %v644_v36 = vld [vmem:[#allocation2 + $0x20] sm:$0xff]  ;;  %v472_v38 = vld [vmem:[%s2035_s10 + $0x18] sm:$0x3f] }
 0x162   :  { %v341_v43 = vsub.f32 1.0, %v340_v39  ;;  %v355_v44 = vmul.f32 %v1826_v30, %v338_v41  ;;  %v205_v55 = vpop.f32.mrf.mxu1  ;;  %v369_v58 = vrot.slane %v368_v51, 2  ;;  %1474 = vmatpush.msk.msrb.mxu2 %vm493_vm6, %v472_v38  ;;  %v643_v39 = vld [vmem:[#allocation2 + $0x18] sm:$0xff]  ;;  %v642_v40 = vld [vmem:[#allocation2 + $0x10] sm:$0xff]  ;;  %v691_v9 = vld [vmem:[#allocation4 + $0x40] sm:$0xff] }
 0x163   :  { %v206_v60 = vadd.f32 %v205_v55, %v1877_v13  ;;  %659 = vmatpush.msrb.mxu1 %v652_v34  ;;  %v471_v41 = vld [vmem:[%s2035_s10 + $0x10] sm:$0x3f]  ;;  %v712_v55 = vld [vmem:[#allocation4 + $0xe8] sm:$0xff]  ;;  %v698_v4 = vld [vmem:[#allocation4 + $0x78] sm:$0xff]  ;;  %v477_v34 = vperm.slane %v1947_v24, 0 }
 0x164   :  { %v342_v49 = vmul.f32 %v1517_v35, %v341_v43  ;;  %v359_v50 = vmul.f32 %v355_v44, %v203_v42  ;;  %v370_v2 = vadd.f32 %v369_v58, %v368_v51  ;;  %v474_v42 = vld [vmem:[%s2035_s10 + $0x28] sm:$0x3f]  ;;  %v640_v44 = vld [vmem:[#allocation2] sm:$0xff]  ;;  %721 = vmatpush.msra.mxu2 %v713_v46  ;;  %v774_v38 = vld [vmem:[#allocation2 + $0xb8] sm:$0xff] }
 0x165   :  { %660 = vmatpush.msrb.mxu1 %v651_v25  ;;  %v641_v43 = vld [vmem:[#allocation2 + $0x8] sm:$0xff]  ;;  %v779_v23 = vld [vmem:[#allocation2 + $0xe0] sm:$0xff] }
 0x166   :  { %v343_v52 = vadd.f32 %v1517_v35, %v342_v49  ;;  %v373_v54 = vrot.slane %v359_v50, 4  ;;  %v371_v6 = vrot.slane %v370_v2, 1  ;;  %v709_v49 = vld [vmem:[#allocation4 + $0xd0] sm:$0xff]  ;;  %722 = vmatpush.msra.mxu2 %v711_v48  ;;  %v708_v58 = vld [vmem:[#allocation4 + $0xc8] sm:$0xff]  ;;  %v767_v46 = vld [vmem:[#allocation2 + $0x80] sm:$0xff] }
 0x167   :  { %661 = vmatpush.msrb.mxu1 %v650_v26 }
 0x168   :  { %v347_v57 = vsel %vm346_vm1, %v1517_v35, %v343_v52  ;;  %v374_v59 = vadd.f32 %v373_v54, %v359_v50  ;;  %v372_v11 = vadd.f32 %v371_v6, %v370_v2  ;;  %723 = vmatpush.msra.mxu2 %v709_v49  ;;  %v1501_v50 = vld [vmem:[%s2034_s9] ss:$0 sm:$0xff]  ;;  %v714_v54 = vld [vmem:[#allocation4 + $0xf8] sm:$0xff]  ;;  %v700_v2 = vld [vmem:[#allocation4 + $0x88] sm:$0xff]  ;;  %vm1438_vm1 = vcmask 3072  }
 0x169   :  { %v352_v30 = vsel %vm349_vm2, %v351_v56, %v347_v57  ;;  %662 = vmatpush.msrb.mxu1 %v649_v27  ;;  %v710_v56 = vld [vmem:[#allocation4 + $0xd8] sm:$0xff]  ;;  %v707_v57 = vld [vmem:[#allocation4 + $0xc0] sm:$0xff]  ;;  %v696_v6 = vld [vmem:[#allocation4 + $0x68] sm:$0xff] }
 0x16a   :  { %v356_v62 = vmul.f32 %v1845_v47, %v352_v30  ;;  %v375_v0 = vrot.slane %v374_v59, 2  ;;  %v410_v17 = vsel %vm409_vm3, %v372_v11, %v366_v16  ;;  %724 = vmatpush.msra.mxu2 %v707_v57  ;;  %v706_v30 = vld [vmem:[#allocation4 + $0xb8] sm:$0xff]  ;;  %v689_v11 = vld [vmem:[#allocation4 + $0x30] sm:$0xff]  ;;  %v688_v16 = vld [vmem:[#allocation4 + $0x28] sm:$0xff] }
 0x16b   :  { %663 = vmatpush.msrb.mxu1 %v648_v28  ;;  %v715_v49 = vld [vmem:[%s2039_s14] sm:$0x3] }
 0x16c   :  { %v360_v1 = vmul.f32 %v356_v62, %v206_v60  ;;  %v376_v3 = vadd.f32 %v375_v0, %v374_v59  ;;  %v705_v59 = vld [vmem:[#allocation4 + $0xb0] sm:$0xff]  ;;  %v703_v60 = vld [vmem:[#allocation4 + $0xa0] sm:$0xff]  ;;  %v704_v62 = vld [vmem:[#allocation4 + $0xa8] sm:$0xff] }
 0x16d   :  { %664 = vmatpush.msrb.mxu1 %v647_v29  ;;  %725 = vmatpush.msra.mxu2 %v705_v59  ;;  %v702_v0 = vld [vmem:[#allocation4 + $0x98] sm:$0xff]  ;;  %v634_v59 = vsel %vm633_vm8, %v1907_v20, 0.0  ;;  %v836_v20 = vld [vmem:[#allocation4 + $0x1c8] sm:$0xff] }
 0x16e   :  { %v379_v5 = vrot.slane %v360_v1, 4  ;;  %v377_v8 = vrot.slane %v376_v3, 1 }
 0x16f   :  { %665 = vmatpush.msrb.mxu1 %v646_v61  ;;  %726 = vmatpush.msra.mxu2 %v703_v60 }
 0x170   :  { %v380_v7 = vadd.f32 %v379_v5, %v360_v1  ;;  %v378_v15 = vadd.f32 %v377_v8, %v376_v3  ;;  %v699_v1 = vld [vmem:[#allocation4 + $0x80] sm:$0xff]  ;;  %v697_v3 = vld [vmem:[#allocation4 + $0x70] sm:$0xff]  ;;  %v694_v8 = vld [vmem:[#allocation4 + $0x58] sm:$0xff] }
 0x171   :  { %666 = vmatpush.msrb.mxu1 %v645_v14  ;;  %727 = vmatpush.msra.mxu2 %v701_v63  ;;  %v695_v5 = vld [vmem:[#allocation4 + $0x60] sm:$0xff] }
 0x172   :  { %v381_v10 = vrot.slane %v380_v7, 2  ;;  %v412_v18 = vsel %vm411_vm4, %v378_v15, %v410_v17  ;;  %v687_v15 = vld [vmem:[#allocation4 + $0x20] sm:$0xff] }
 0x173   :  { %667 = vmatpush.msrb.mxu1 %v644_v36  ;;  %728 = vmatpush.msra.mxu2 %v699_v1  ;;  %v683_v17 = vld [vmem:[#allocation4] sm:$0xff]  ;;  %v776_v36 = vld [vmem:[#allocation2 + $0xc8] sm:$0xff]  ;;  %v841_v1 = vld [vmem:[#allocation4 + $0x1f0] sm:$0xff] }
 0x174   :  { %v382_v12 = vadd.f32 %v381_v10, %v380_v7  ;;  %v693_v7 = vld [vmem:[#allocation4 + $0x50] sm:$0xff]  ;;  %v692_v10 = vld [vmem:[#allocation4 + $0x48] sm:$0xff] }
 0x175   :  { %668 = vmatpush.msrb.mxu1 %v643_v39  ;;  %729 = vmatpush.msra.mxu2 %v697_v3  ;;  %v773_v39 = vld [vmem:[#allocation2 + $0xb0] sm:$0xff]  ;;  %v839_v3 = vld [vmem:[#allocation4 + $0x1e0] sm:$0xff] }
 0x176   :  { %v383_v13 = vrot.slane %v382_v12, 1 }
 0x177   :  { %669 = vmatpush.msrb.mxu1 %v642_v40  ;;  %730 = vmatpush.msra.mxu2 %v695_v5  ;;  %v772_v40 = vld [vmem:[#allocation2 + $0xa8] sm:$0xff]  ;;  %v837_v5 = vld [vmem:[#allocation4 + $0x1d0] sm:$0xff] }
 0x178   :  { %v384_v47 = vadd.f32 %v383_v13, %v382_v12  ;;  %v690_v12 = vld [vmem:[#allocation4 + $0x38] sm:$0xff]  ;;  %v685_v13 = vld [vmem:[#allocation4 + $0x10] sm:$0xff] }
 0x179   :  { %670 = vmatpush.msrb.mxu1 %v641_v43  ;;  %731 = vmatpush.msra.mxu2 %v693_v7  ;;  %v769_v43 = vld [vmem:[#allocation2 + $0x90] sm:$0xff]  ;;  %v835_v7 = vld [vmem:[#allocation4 + $0x1c0] sm:$0xff] }
 0x17a   :  { %v414_v19 = vsel %vm413_vm5, %v384_v47, %v412_v18  ;;  %v686_v47 = vld [vmem:[#allocation4 + $0x18] sm:$0xff]  ;;  %v684_v18 = vld [vmem:[#allocation4 + $0x8] sm:$0xff] }
 0x17b   :  { %432 = vmatmul.f32.vlgmr.msra.gmra.mxu3 %v414_v19  ;;  %671 = vmatpush.msrb.mxu1 %v640_v44  ;;  %v782_v19 = vld [vmem:[#allocation2 + $0xf8] sm:$0xff]  ;;  %v768_v44 = vld [vmem:[#allocation2 + $0x88] sm:$0xff] }
 0x17c   :  { %1472 = vmatpush.msk.msra.mxu3 %vm493_vm6, %v471_v41  ;;  %732 = vmatpush.msra.mxu2 %v691_v9  ;;  %v771_v41 = vld [vmem:[#allocation2 + $0xa0] sm:$0xff]  ;;  %v834_v9 = vld [vmem:[#allocation4 + $0x1b8] sm:$0xff] }
 0x17d   :  { %850 = vmatpush.msra.mxu1 %v841_v1  ;;  %v905_v1 = vld [vmem:[#allocation2 + $0x100] sm:$0xff] }
 0x17e   :  { %733 = vmatpush.msra.mxu2 %v689_v11  ;;  %v832_v11 = vld [vmem:[#allocation4 + $0x1a8] sm:$0xff] }
 0x17f   :  { %851 = vmatpush.msra.mxu1 %v839_v3 }
 0x180   :  { %734 = vmatpush.msra.mxu2 %v687_v15  ;;  %v830_v15 = vld [vmem:[#allocation4 + $0x198] sm:$0xff] }
 0x181   :  { %852 = vmatpush.msra.mxu1 %v837_v5 }
 0x182   :  { %735 = vmatpush.msra.mxu2 %v685_v13  ;;  %v828_v13 = vld [vmem:[#allocation4 + $0x188] sm:$0xff] }
 0x183   :  { %853 = vmatpush.msra.mxu1 %v835_v7 }
 0x184   :  { %736 = vmatpush.msra.mxu2 %v683_v17  ;;  %v826_v17 = vld [vmem:[#allocation4 + $0x178] sm:$0xff] }
 0x1cd   :  { %v1933_v45 = vpop.permute.xlu0 %636 }
 0x1ce   :  { %1480 = vmatmul.msk.f32.vlgmr.msrb.gmra.mxu1 %vm633_vm8, %v1933_v45 }
 0x1fe   :  { %v433_v32 = vpop.f32.mrf.mxu3 }
 0x1ff   :  { %v434_v33 = vadd.f32 %v1500_v31, %v433_v32 }
 0x201   :  { %v436_v35 = vmax.f32 %v434_v33, 0.0  ;;  %v778_v33 = vld [vmem:[#allocation2 + $0xd8] sm:$0xff] }
 0x203   :  { %1467 = vmatmul.msk.f32.vlgmr.msrb.gmra.mxu0 %vm445_vm7, %v436_v35  ;;  %v777_v35 = vld [vmem:[#allocation2 + $0xd0] sm:$0xff] }
 0x204   :  { %1478 = vmatpush.msk.msrb.mxu0 %vm493_vm6, %v474_v42  ;;  %v770_v42 = vld [vmem:[#allocation2 + $0x98] sm:$0xff] }
 0x24b   :  { %v673_v26 = vpop.f32.mrf.mxu1 }
 0x280   :  { %v466_v51 = vpop.f32.mrf.mxu0 }
 0x281   :  { %v467_v52 = vadd.f32 %v1501_v50, %v466_v51  ;;  %v717_v50 = vperm.slane %v715_v49, 0 }
 0x283   :  { %1469 = vmatmul.msk.f32.vlgmr.msrb.gmra.mxu3 %vm489_vm9, %v467_v52  ;;  %1471 = vmatmul.msk.f32.vlgmr.msra.gmra.mxu0 %vm489_vm9, %v467_v52 }
 0x284   :  { %1475 = vmatmul.msk.f32.vlgmr.msrb.gmra.mxu2 %vm489_vm9, %v467_v52  ;;  %1476 = vmatpush.msk.msrb.mxu3 %vm493_vm6, %v473_v53 }
 0x285   :  { %783 = vmatpush.msra.mxu0 %v782_v19  ;;  %v824_v19 = vld [vmem:[#allocation4 + $0x168] sm:$0xff] }
 0x287   :  { %784 = vmatpush.msra.mxu0 %v781_v21  ;;  %v821_v21 = vld [vmem:[#allocation4 + $0x150] sm:$0xff] }
 0x289   :  { %785 = vmatpush.msra.mxu0 %v780_v22  ;;  %v822_v22 = vld [vmem:[#allocation4 + $0x158] sm:$0xff] }
 0x28b   :  { %1473 = vmatmul.msk.f32.vlgmr.msra.gmra.mxu3 %vm489_vm9, %v467_v52  ;;  %1479 = vmatmul.msk.f32.vlgmr.msrb.gmra.mxu0 %vm489_vm9, %v467_v52 }
 0x28c   :  { %741 = vmatpush.msra.mxu3 %v714_v54  ;;  %786 = vmatpush.msra.mxu0 %v779_v23  ;;  %v819_v23 = vld [vmem:[#allocation4 + $0x140] sm:$0xff] }
 0x28e   :  { %742 = vmatpush.msra.mxu3 %v712_v55  ;;  %787 = vmatpush.msra.mxu0 %v778_v33  ;;  %v920_v33 = vld [vmem:[#allocation2 + $0x178] sm:$0xff] }
 0x290   :  { %743 = vmatpush.msra.mxu3 %v710_v56  ;;  %788 = vmatpush.msra.mxu0 %v777_v35  ;;  %v919_v35 = vld [vmem:[#allocation2 + $0x170] sm:$0xff] }
 0x292   :  { %744 = vmatpush.msra.mxu3 %v708_v58  ;;  %789 = vmatpush.msra.mxu0 %v776_v36  ;;  %v718_v58 = vperm.slane %v715_v49, 1  ;;  %v918_v36 = vld [vmem:[#allocation2 + $0x168] sm:$0xff] }
 0x293   :  { %1477 = vmatmul.msk.f32.vlgmr.msrb.gmra.mxu3 %vm489_vm9, %v467_v52 }
 0x294   :  { %745 = vmatpush.msra.mxu3 %v706_v30  ;;  %790 = vmatpush.msra.mxu0 %v775_v37  ;;  %v917_v37 = vld [vmem:[#allocation2 + $0x160] sm:$0xff] }
 0x296   :  { %746 = vmatpush.msra.mxu3 %v704_v62  ;;  %791 = vmatpush.msra.mxu0 %v774_v38 }
 0x298   :  { %747 = vmatpush.msra.mxu3 %v702_v0  ;;  %792 = vmatpush.msra.mxu0 %v773_v39  ;;  %v478_v39 = vperm.slane %v1947_v24, 1 }
 0x29a   :  { %748 = vmatpush.msra.mxu3 %v700_v2  ;;  %793 = vmatpush.msra.mxu0 %v772_v40  ;;  %v842_v2 = vld [vmem:[#allocation4 + $0x1f8] sm:$0xff] }
 0x29b   :  { %870 = vmatpush.msrb.mxu2 %v842_v2  ;;  %v1483_v2 = vld [vmem:[%s2039_s14 + $0x2] sm:$0x3] }
 0x29c   :  { %749 = vmatpush.msra.mxu3 %v698_v4  ;;  %794 = vmatpush.msra.mxu0 %v771_v41  ;;  %v840_v4 = vld [vmem:[#allocation4 + $0x1e8] sm:$0xff]  ;;  %v846_v3 = vperm.slane %v1483_v2, 0 }
 0x29d   :  { %871 = vmatpush.msrb.mxu2 %v840_v4 }
 0x29e   :  { %750 = vmatpush.msra.mxu3 %v696_v6  ;;  %795 = vmatpush.msra.mxu0 %v770_v42  ;;  %v838_v6 = vld [vmem:[#allocation4 + $0x1d8] sm:$0xff] }
 0x29f   :  { %872 = vmatpush.msrb.mxu2 %v838_v6 }
 0x2a0   :  { %751 = vmatpush.msra.mxu3 %v694_v8  ;;  %796 = vmatpush.msra.mxu0 %v769_v43  ;;  %v833_v8 = vld [vmem:[#allocation4 + $0x1b0] sm:$0xff] }
 0x2a1   :  { %873 = vmatpush.msrb.mxu2 %v836_v20  ;;  %854 = vmatpush.msra.mxu1 %v833_v8  ;;  %v847_v8 = vperm.slane %v1483_v2, 1 }
 0x2a2   :  { %752 = vmatpush.msra.mxu3 %v692_v10  ;;  %797 = vmatpush.msra.mxu0 %v768_v44  ;;  %v831_v10 = vld [vmem:[#allocation4 + $0x1a0] sm:$0xff] }
 0x2a3   :  { %874 = vmatpush.msrb.mxu2 %v834_v9  ;;  %855 = vmatpush.msra.mxu1 %v831_v10 }
 0x2a4   :  { %753 = vmatpush.msra.mxu3 %v690_v12  ;;  %798 = vmatpush.msra.mxu0 %v767_v46  ;;  %v829_v12 = vld [vmem:[#allocation4 + $0x190] sm:$0xff] }
 0x2a5   :  { %875 = vmatpush.msrb.mxu2 %v832_v11  ;;  %856 = vmatpush.msra.mxu1 %v829_v12  ;;  %v639_v11 = vsel %vm633_vm8, %v1933_v45, 0.0  ;;  %v971_v45 = vld [vmem:[#allocation4 + $0x2b0] sm:$0xff] }
 0x2a6   :  { %754 = vmatpush.msra.mxu3 %v688_v16  ;;  %v827_v16 = vld [vmem:[#allocation4 + $0x180] sm:$0xff] }
 0x2a7   :  { %876 = vmatpush.msrb.mxu2 %v830_v15  ;;  %857 = vmatpush.msra.mxu1 %v827_v16 }
 0x2a8   :  { %755 = vmatpush.msra.mxu3 %v686_v47  ;;  %v825_v47 = vld [vmem:[#allocation4 + $0x170] sm:$0xff] }
 0x2a9   :  { %877 = vmatpush.msrb.mxu2 %v828_v13  ;;  %858 = vmatpush.msra.mxu1 %v825_v47  ;;  %v979_v13 = vld [vmem:[#allocation4 + $0x2f0] sm:$0xff]  ;;  %v980_v47 = vld [vmem:[#allocation4 + $0x2f8] sm:$0xff] }
 0x2aa   :  { %756 = vmatpush.msra.mxu3 %v684_v18  ;;  %v823_v18 = vld [vmem:[#allocation4 + $0x160] sm:$0xff]  ;;  %988 = vmatpush.msrb.mxu0 %v979_v13 }
 0x2ab   :  { %878 = vmatpush.msrb.mxu2 %v826_v17  ;;  %859 = vmatpush.msra.mxu1 %v823_v18  ;;  %v977_v17 = vld [vmem:[#allocation4 + $0x2e0] sm:$0xff]  ;;  %v978_v18 = vld [vmem:[#allocation4 + $0x2e8] sm:$0xff] }
 0x2ac   :  { %921 = vmatpush.msrb.mxu3 %v920_v33  ;;  %989 = vmatpush.msrb.mxu0 %v977_v17  ;;  %v962_v33 = vld [vmem:[#allocation4 + $0x268] sm:$0xff] }
 0x2ad   :  { %879 = vmatpush.msrb.mxu2 %v824_v19  ;;  %860 = vmatpush.msra.mxu1 %v821_v21  ;;  %v975_v19 = vld [vmem:[#allocation4 + $0x2d0] sm:$0xff]  ;;  %v976_v21 = vld [vmem:[#allocation4 + $0x2d8] sm:$0xff] }
 0x2ae   :  { %922 = vmatpush.msrb.mxu3 %v919_v35  ;;  %990 = vmatpush.msrb.mxu0 %v975_v19  ;;  %v959_v35 = vld [vmem:[#allocation4 + $0x250] sm:$0xff] }
 0x2af   :  { %880 = vmatpush.msrb.mxu2 %v822_v22  ;;  %861 = vmatpush.msra.mxu1 %v819_v23  ;;  %v973_v22 = vld [vmem:[#allocation4 + $0x2c0] sm:$0xff]  ;;  %v974_v23 = vld [vmem:[#allocation4 + $0x2c8] sm:$0xff] }
 0x2b0   :  { %923 = vmatpush.msrb.mxu3 %v918_v36  ;;  %991 = vmatpush.msrb.mxu0 %v973_v22  ;;  %v960_v36 = vld [vmem:[#allocation4 + $0x258] sm:$0xff] }
 0x2b2   :  { %924 = vmatpush.msrb.mxu3 %v917_v37  ;;  %992 = vmatpush.msrb.mxu0 %v971_v45  ;;  %v957_v37 = vld [vmem:[#allocation4 + $0x240] sm:$0xff] }
 0x306   :  { %v529_v25 = vpop.f32.mrf.mxu3 }
 0x307   :  { %v530_v27 = vadd.f32 %v529_v25, %v477_v34  ;;  %v1950_v48 = vpop.f32.mrf.mxu2  ;;  %v820_v34 = vld [vmem:[#allocation4 + $0x148] sm:$0xff]  ;;  %v817_v25 = vld [vmem:[#allocation4 + $0x130] sm:$0xff] }
 0x308   :  { %881 = vmatpush.msrb.mxu2 %v820_v34  ;;  %862 = vmatpush.msra.mxu1 %v817_v25  ;;  %v972_v34 = vld [vmem:[#allocation4 + $0x2b8] sm:$0xff]  ;;  %v969_v25 = vld [vmem:[#allocation4 + $0x2a0] sm:$0xff] }
 0x309   :  { %v676_v28 = vadd.f32 %v673_v26, %v530_v27  ;;  %v818_v26 = vld [vmem:[#allocation4 + $0x138] sm:$0xff]  ;;  %v815_v27 = vld [vmem:[#allocation4 + $0x120] sm:$0xff]  ;;  %993 = vmatpush.msrb.mxu0 %v969_v25 }
 0x30a   :  { %882 = vmatpush.msrb.mxu2 %v818_v26  ;;  %863 = vmatpush.msra.mxu1 %v815_v27  ;;  %v970_v26 = vld [vmem:[#allocation4 + $0x2a8] sm:$0xff]  ;;  %v967_v27 = vld [vmem:[#allocation4 + $0x290] sm:$0xff] }
 0x30b   :  { %v678_v29 = vmin.f32 %v676_v28, 0.0  ;;  %vm677_vm10 = vcmp.gt.f32.partialorder %v676_v28, 0.0  ;;  %994 = vmatpush.msrb.mxu0 %v967_v27  ;;  %v1108_v27 = vld [vmem:[#allocation4 + $0x3f0] sm:$0xff] }
 0x30d   :  { %v679_v61 = vmul.f32 1.442695, %v678_v29  ;;  %v549_v29 = vpop.f32.mrf.mxu0 }
 0x30e   :  { %v1955_v51 = vpop.f32.mrf.mxu3  ;;  %v550_v40 = vadd.f32 %v549_v29, %v478_v39  ;;  %v965_v29 = vld [vmem:[#allocation4 + $0x280] sm:$0xff]  ;;  %v958_v39 = vld [vmem:[#allocation4 + $0x248] sm:$0xff] }
 0x30f   :  { %1518 = vpow2.f32 %v679_v61  ;;  %v813_v61 = vld [vmem:[#allocation4 + $0x110] sm:$0xff]  ;;  %995 = vmatpush.msrb.mxu0 %v965_v29  ;;  %v1106_v29 = vld [vmem:[#allocation4 + $0x3e0] sm:$0xff] }
 0x310   :  { %864 = vmatpush.msra.mxu1 %v813_v61  ;;  %v966_v61 = vld [vmem:[#allocation4 + $0x288] sm:$0xff] }
 0x315   :  { %v1519_v14 = vpop.eup %1518  ;;  %v1965_v38 = vpop.f32.mrf.mxu0 }
 0x316   :  { %v1481_v31 = vadd.f32 -1.0, %v1519_v14  ;;  %v1957_v54 = vpop.f32.mrf.mxu3  ;;  %v814_v14 = vld [vmem:[#allocation4 + $0x118] sm:$0xff] }
 0x318   :  { %v682_v32 = vsel %vm677_vm10, %v676_v28, %v1481_v31  ;;  %v816_v28 = vld [vmem:[#allocation4 + $0x128] sm:$0xff]  ;;  %v811_v31 = vld [vmem:[#allocation4 + $0x100] sm:$0xff] }
 0x319   :  { %737 = vmatmul.f32.vlgmr.msra.gmra.mxu2 %v682_v32  ;;  %757 = vmatmul.f32.vlgmr.msra.gmra.mxu3 %v682_v32  ;;  %v812_v32 = vld [vmem:[#allocation4 + $0x108] sm:$0xff] }
 0x31a   :  { %883 = vmatpush.msrb.mxu2 %v816_v28  ;;  %865 = vmatpush.msra.mxu1 %v811_v31  ;;  %v968_v28 = vld [vmem:[#allocation4 + $0x298] sm:$0xff] }
 0x31b   :  { %v964_v31 = vld [vmem:[#allocation4 + $0x278] sm:$0xff] }
 0x31c   :  { %884 = vmatpush.msrb.mxu2 %v814_v14  ;;  %1008 = vmatpush.msrb.mxu1 %v980_v47  ;;  %v963_v14 = vld [vmem:[#allocation4 + $0x270] sm:$0xff] }
 0x31d   :  { %996 = vmatpush.msrb.mxu0 %v963_v14  ;;  %v1104_v14 = vld [vmem:[#allocation4 + $0x3d0] sm:$0xff] }
 0x31e   :  { %885 = vmatpush.msrb.mxu2 %v812_v32  ;;  %1009 = vmatpush.msrb.mxu1 %v978_v18  ;;  %v961_v32 = vld [vmem:[#allocation4 + $0x260] sm:$0xff] }
 0x31f   :  { %997 = vmatpush.msrb.mxu0 %v961_v32  ;;  %v1102_v32 = vld [vmem:[#allocation4 + $0x3c0] sm:$0xff] }
 0x320   :  { %1010 = vmatpush.msrb.mxu1 %v976_v21 }
 0x321   :  { %998 = vmatpush.msrb.mxu0 %v959_v35  ;;  %v1100_v35 = vld [vmem:[#allocation4 + $0x3b0] sm:$0xff] }
 0x322   :  { %1011 = vmatpush.msrb.mxu1 %v974_v23 }
 0x323   :  { %999 = vmatpush.msrb.mxu0 %v957_v37  ;;  %v1099_v37 = vld [vmem:[#allocation4 + $0x3a8] sm:$0xff] }
 0x324   :  { %1012 = vmatpush.msrb.mxu1 %v972_v34 }
 0x326   :  { %1013 = vmatpush.msrb.mxu1 %v970_v26 }
 0x328   :  { %1014 = vmatpush.msrb.mxu1 %v968_v28  ;;  %v1109_v28 = vld [vmem:[#allocation4 + $0x3f8] sm:$0xff] }
 0x32a   :  { %1015 = vmatpush.msrb.mxu1 %v966_v61  ;;  %v1107_v61 = vld [vmem:[#allocation4 + $0x3e8] sm:$0xff] }
 0x32c   :  { %1016 = vmatpush.msrb.mxu1 %v964_v31  ;;  %v1105_v31 = vld [vmem:[#allocation4 + $0x3d8] sm:$0xff] }
 0x32e   :  { %1017 = vmatpush.msrb.mxu1 %v962_v33  ;;  %v1103_v33 = vld [vmem:[#allocation4 + $0x3c8] sm:$0xff] }
 0x330   :  { %1018 = vmatpush.msrb.mxu1 %v960_v36  ;;  %v1098_v36 = vld [vmem:[#allocation4 + $0x3a0] sm:$0xff] }
 0x332   :  { %1019 = vmatpush.msrb.mxu1 %v958_v39  ;;  %v1096_v39 = vld [vmem:[#allocation4 + $0x390] sm:$0xff] }
 0x39c   :  { %v738_v52 = vpop.f32.mrf.mxu2  ;;  %v758_v30 = vpop.f32.mrf.mxu3 }
 0x39d   :  { %v739_v53 = vadd.f32 %v738_v52, %v717_v50  ;;  %v759_v62 = vadd.f32 %v758_v30, %v718_v58  ;;  %v916_v52 = vld [vmem:[#allocation2 + $0x158] sm:$0xff]  ;;  %v911_v58 = vld [vmem:[#allocation2 + $0x130] sm:$0xff]  ;;  %v909_v30 = vld [vmem:[#allocation2 + $0x120] sm:$0xff] }
 0x39e   :  { %925 = vmatpush.msrb.mxu3 %v916_v52  ;;  %v1049_v52 = vld [vmem:[#allocation2 + $0x1f8] sm:$0xff] }
 0x39f   :  { %1520 = vtanh.f32 %v739_v53  ;;  %v915_v53 = vld [vmem:[#allocation2 + $0x150] sm:$0xff]  ;;  %1050 = vmatpush.msra.mxu2 %v1049_v52  ;;  %v1089_v52 = vld [vmem:[#allocation4 + $0x358] sm:$0xff] }
 0x3a0   :  { %926 = vmatpush.msrb.mxu3 %v915_v53  ;;  %v1048_v53 = vld [vmem:[#allocation2 + $0x1f0] sm:$0xff] }
 0x3a1   :  { %1051 = vmatpush.msra.mxu2 %v1048_v53  ;;  %v1086_v53 = vld [vmem:[#allocation4 + $0x340] sm:$0xff] }
 0x3a5   :  { %v1521_v55 = vpop.eup %1520 }
 0x3a6   :  { %v762_v56 = vmul.f32 1.442695, %v1521_v55  ;;  %v896_v57 = vsel %vm895_vm11, %v1521_v55, 0.0  ;;  %v914_v55 = vld [vmem:[#allocation2 + $0x148] sm:$0xff] }
 0x3a7   :  { %897 = vadd.xlane.f32.xlu0 %v896_v57  ;;  %927 = vmatpush.msrb.mxu3 %v914_v55  ;;  %v912_v57 = vld [vmem:[#allocation2 + $0x138] sm:$0xff]  ;;  %v1047_v55 = vld [vmem:[#allocation2 + $0x1e8] sm:$0xff] }
 0x3a8   :  { %1522 = vpow2.f32 %v762_v56  ;;  %v913_v56 = vld [vmem:[#allocation2 + $0x140] sm:$0xff]  ;;  %1052 = vmatpush.msra.mxu2 %v1047_v55  ;;  %v1087_v55 = vld [vmem:[#allocation4 + $0x348] sm:$0xff] }
 0x3a9   :  { %928 = vmatpush.msrb.mxu3 %v913_v56  ;;  %v1046_v56 = vld [vmem:[#allocation2 + $0x1e0] sm:$0xff] }
 0x3aa   :  { %1053 = vmatpush.msra.mxu2 %v1046_v56  ;;  %v1084_v56 = vld [vmem:[#allocation4 + $0x330] sm:$0xff] }
 0x3ab   :  { %929 = vmatpush.msrb.mxu3 %v912_v57  ;;  %v479_v57 = vperm.slane %v1947_v24, 2 }
 0x3ad   :  { %930 = vmatpush.msrb.mxu3 %v911_v58  ;;  %v570_v58 = vadd.f32 %v1955_v51, %v479_v57  ;;  %v1041_v51 = vld [vmem:[#allocation2 + $0x1b8] sm:$0xff] }
 0x3ae   :  { %v1523_v60 = vpop.eup %1522  ;;  %v1085_v57 = vld [vmem:[#allocation4 + $0x338] sm:$0xff] }
 0x3af   :  { %v764_v63 = vmul.f32 %v1523_v60, %v634_v59  ;;  %v910_v59 = vld [vmem:[#allocation2 + $0x128] sm:$0xff]  ;;  %v908_v60 = vld [vmem:[#allocation2 + $0x118] sm:$0xff] }
 0x3b0   :  { %931 = vmatpush.msrb.mxu3 %v910_v59 }
 0x3b1   :  { %v1962_v0 = vadd.f32 %v764_v63, %v759_v62  ;;  %v907_v62 = vld [vmem:[#allocation2 + $0x110] sm:$0xff]  ;;  %v906_v63 = vld [vmem:[#allocation2 + $0x108] sm:$0xff] }
 0x3b2   :  { %932 = vmatpush.msrb.mxu3 %v909_v30 }
 0x3b3   :  { %799 = vmatmul.f32.vlgmr.msra.gmra.mxu0 %v1962_v0 }
 0x3b4   :  { %933 = vmatpush.msrb.mxu3 %v908_v60 }
 0x3b6   :  { %934 = vmatpush.msrb.mxu3 %v907_v62 }
 0x3b8   :  { %935 = vmatpush.msrb.mxu3 %v906_v63 }
 0x3ba   :  { %936 = vmatpush.msrb.mxu3 %v905_v1 }
 0x3bc   :  { %1117 = vmatpush.msra.mxu3 %v1108_v27 }
 0x3be   :  { %1118 = vmatpush.msra.mxu3 %v1106_v29 }
 0x3c0   :  { %1119 = vmatpush.msra.mxu3 %v1104_v14 }
 0x3c2   :  { %1120 = vmatpush.msra.mxu3 %v1102_v32 }
 0x3c4   :  { %1121 = vmatpush.msra.mxu3 %v1100_v35 }
 0x3c6   :  { %1122 = vmatpush.msra.mxu3 %v1098_v36  ;;  %v1245_v36 = vld [vmem:[#allocation4 + $0x4f0] sm:$0xff] }
 0x3c8   :  { %1123 = vmatpush.msra.mxu3 %v1096_v39  ;;  %v1243_v39 = vld [vmem:[#allocation4 + $0x4e0] sm:$0xff] }
 0x430   :  { %v800_v41 = vpop.f32.mrf.mxu0 }
 0x431   :  { %v803_v42 = vadd.f32 %v800_v41, %v550_v40  ;;  %v955_v40 = vld [vmem:[#allocation4 + $0x230] sm:$0xff]  ;;  %v956_v41 = vld [vmem:[#allocation4 + $0x238] sm:$0xff] }
 0x432   :  { %1000 = vmatpush.msrb.mxu0 %v955_v40  ;;  %1020 = vmatpush.msrb.mxu1 %v956_v41  ;;  %v1097_v40 = vld [vmem:[#allocation4 + $0x398] sm:$0xff]  ;;  %v1094_v41 = vld [vmem:[#allocation4 + $0x380] sm:$0xff] }
 0x433   :  { %v805_v43 = vmin.f32 %v803_v42, 0.0  ;;  %vm804_vm12 = vcmp.gt.f32.partialorder %v803_v42, 0.0  ;;  %1124 = vmatpush.msra.mxu3 %v1094_v41  ;;  %v1241_v41 = vld [vmem:[#allocation4 + $0x4d0] sm:$0xff] }
 0x435   :  { %v806_v44 = vmul.f32 1.442695, %v805_v43  ;;  %v954_v43 = vld [vmem:[#allocation4 + $0x228] sm:$0xff] }
 0x436   :  { %1021 = vmatpush.msrb.mxu1 %v954_v43  ;;  %v1092_v43 = vld [vmem:[#allocation4 + $0x370] sm:$0xff] }
 0x437   :  { %1524 = vpow2.f32 %v806_v44  ;;  %v951_v44 = vld [vmem:[#allocation4 + $0x210] sm:$0xff]  ;;  %1125 = vmatpush.msra.mxu3 %v1092_v43  ;;  %v1239_v43 = vld [vmem:[#allocation4 + $0x4c0] sm:$0xff] }
 0x43d   :  { %v1525_v46 = vpop.eup %1524 }
 0x43e   :  { %v1482_v49 = vadd.f32 -1.0, %v1525_v46  ;;  %v952_v46 = vld [vmem:[#allocation4 + $0x218] sm:$0xff] }
 0x43f   :  { %1022 = vmatpush.msrb.mxu1 %v952_v46  ;;  %v1090_v46 = vld [vmem:[#allocation4 + $0x360] sm:$0xff] }
 0x440   :  { %v809_v50 = vsel %vm804_vm12, %v803_v42, %v1482_v49  ;;  %v953_v42 = vld [vmem:[#allocation4 + $0x220] sm:$0xff]  ;;  %1126 = vmatpush.msra.mxu3 %v1090_v46  ;;  %v1237_v46 = vld [vmem:[#allocation4 + $0x4b0] sm:$0xff] }
 0x441   :  { %866 = vmatmul.f32.vlgmr.msra.gmra.mxu1 %v809_v50  ;;  %886 = vmatmul.f32.vlgmr.msrb.gmra.mxu2 %v809_v50  ;;  %v949_v49 = vld [vmem:[#allocation4 + $0x200] sm:$0xff]  ;;  %v950_v50 = vld [vmem:[#allocation4 + $0x208] sm:$0xff] }
 0x442   :  { %1001 = vmatpush.msrb.mxu0 %v953_v42  ;;  %1023 = vmatpush.msrb.mxu1 %v950_v50  ;;  %v1095_v42 = vld [vmem:[#allocation4 + $0x388] sm:$0xff]  ;;  %v1088_v50 = vld [vmem:[#allocation4 + $0x350] sm:$0xff] }
 0x443   :  { %1127 = vmatpush.msra.mxu3 %v1088_v50  ;;  %v1236_v50 = vld [vmem:[#allocation4 + $0x4a8] sm:$0xff] }
 0x444   :  { %1002 = vmatpush.msrb.mxu0 %v951_v44  ;;  %v1093_v44 = vld [vmem:[#allocation4 + $0x378] sm:$0xff] }
 0x445   :  { %1128 = vmatpush.msra.mxu3 %v1086_v53  ;;  %v1234_v53 = vld [vmem:[#allocation4 + $0x498] sm:$0xff] }
 0x446   :  { %1003 = vmatpush.msrb.mxu0 %v949_v49  ;;  %v1091_v49 = vld [vmem:[#allocation4 + $0x368] sm:$0xff] }
 0x447   :  { %1129 = vmatpush.msra.mxu3 %v1084_v56  ;;  %v1232_v56 = vld [vmem:[#allocation4 + $0x488] sm:$0xff] }
 0x448   :  { %1137 = vmatpush.msra.mxu0 %v1109_v28 }
 0x44a   :  { %1138 = vmatpush.msra.mxu0 %v1107_v61 }
 0x44c   :  { %1139 = vmatpush.msra.mxu0 %v1105_v31 }
 0x44e   :  { %1140 = vmatpush.msra.mxu0 %v1103_v33 }
 0x4be   :  { %v867_v4 = vpop.f32.mrf.mxu1 }
 0x4bf   :  { %v868_v5 = vadd.f32 %v867_v4, %v846_v3  ;;  %v1045_v3 = vld [vmem:[#allocation2 + $0x1d8] sm:$0xff]  ;;  %v1044_v4 = vld [vmem:[#allocation2 + $0x1d0] sm:$0xff] }
 0x4c0   :  { %1054 = vmatpush.msra.mxu2 %v1045_v3 }
 0x4c1   :  { %1526 = vtanh.f32 %v868_v5  ;;  %v1043_v5 = vld [vmem:[#allocation2 + $0x1c8] sm:$0xff] }
 0x4c2   :  { %1055 = vmatpush.msra.mxu2 %v1044_v4 }
 0x4c4   :  { %v887_v9 = vpop.f32.mrf.mxu2  ;;  %1056 = vmatpush.msra.mxu2 %v1043_v5 }
 0x4c5   :  { %v888_v12 = vadd.f32 %v887_v9, %v847_v8  ;;  %v1038_v8 = vld [vmem:[#allocation2 + $0x1a0] sm:$0xff]  ;;  %v1037_v9 = vld [vmem:[#allocation2 + $0x198] sm:$0xff] }
 0x4c7   :  { %v1527_v6 = vpop.eup %1526 }
 0x4c8   :  { %v891_v7 = vmul.f32 1.442695, %v1527_v6  ;;  %v900_v20 = vsel %vm895_vm11, %v1527_v6, 0.0  ;;  %v1042_v6 = vld [vmem:[#allocation2 + $0x1c0] sm:$0xff] }
 0x4c9   :  { %901 = vadd.xlane.f32.xlu1 %v900_v20  ;;  %1057 = vmatpush.msra.mxu2 %v1042_v6  ;;  %v1039_v20 = vld [vmem:[#allocation2 + $0x1a8] sm:$0xff] }
 0x4ca   :  { %1528 = vpow2.f32 %v891_v7  ;;  %v1040_v7 = vld [vmem:[#allocation2 + $0x1b0] sm:$0xff] }
 0x4cb   :  { %1058 = vmatpush.msra.mxu2 %v1041_v51 }
 0x4cd   :  { %1059 = vmatpush.msra.mxu2 %v1040_v7 }
 0x4cf   :  { %1060 = vmatpush.msra.mxu2 %v1039_v20 }
 0x4d0   :  { %v1529_v10 = vpop.eup %1528 }
 0x4d1   :  { %v893_v15 = vmul.f32 %v1529_v10, %v639_v11  ;;  %1061 = vmatpush.msra.mxu2 %v1038_v8  ;;  %v1036_v10 = vld [vmem:[#allocation2 + $0x190] sm:$0xff]  ;;  %v1035_v11 = vld [vmem:[#allocation2 + $0x188] sm:$0xff] }
 0x4d3   :  { %v1974_v16 = vadd.f32 %v893_v15, %v888_v12  ;;  %1062 = vmatpush.msra.mxu2 %v1037_v9  ;;  %v1034_v12 = vld [vmem:[#allocation2 + $0x180] sm:$0xff]  ;;  %v1185_v9 = vld [vmem:[#allocation2 + $0x270] sm:$0xff] }
 0x4d4   :  { %v1485_v15 = vld [vmem:[%s2039_s14 + $0x4] sm:$0x3] }
 0x4d5   :  { %937 = vmatmul.f32.vlgmr.msrb.gmra.mxu3 %v1974_v16  ;;  %1063 = vmatpush.msra.mxu2 %v1036_v10  ;;  %v984_v13 = vperm.slane %v1485_v15, 0  ;;  %v985_v22 = vperm.slane %v1485_v15, 1  ;;  %v1184_v10 = vld [vmem:[#allocation2 + $0x268] sm:$0xff]  ;;  %v1179_v15 = vld [vmem:[#allocation2 + $0x240] sm:$0xff] }
 0x4d7   :  { %1064 = vmatpush.msra.mxu2 %v1035_v11  ;;  %v1183_v11 = vld [vmem:[#allocation2 + $0x260] sm:$0xff] }
 0x4d9   :  { %1065 = vmatpush.msra.mxu2 %v1034_v12  ;;  %v1180_v12 = vld [vmem:[#allocation2 + $0x248] sm:$0xff] }
 0x4db   :  { %1254 = vmatpush.msrb.mxu2 %v1245_v36 }
 0x4dd   :  { %1255 = vmatpush.msrb.mxu2 %v1243_v39 }
 0x4df   :  { %1256 = vmatpush.msrb.mxu2 %v1241_v41 }
 0x4e1   :  { %1257 = vmatpush.msrb.mxu2 %v1239_v43 }
 0x4e3   :  { %1258 = vmatpush.msrb.mxu2 %v1237_v46 }
 0x558   :  { %v938_v59 = vpop.f32.mrf.mxu3 }
 0x559   :  { %v941_v30 = vadd.f32 %v938_v59, %v570_v58  ;;  %v1082_v58 = vld [vmem:[#allocation4 + $0x320] sm:$0xff]  ;;  %v1083_v59 = vld [vmem:[#allocation4 + $0x328] sm:$0xff] }
 0x55a   :  { %1130 = vmatpush.msra.mxu3 %v1082_v58  ;;  %v1230_v58 = vld [vmem:[#allocation4 + $0x478] sm:$0xff] }
 0x55b   :  { %v943_v60 = vmin.f32 %v941_v30, 0.0  ;;  %vm942_vm13 = vcmp.gt.f32.partialorder %v941_v30, 0.0 }
 0x55d   :  { %v944_v62 = vmul.f32 1.442695, %v943_v60  ;;  %v1081_v60 = vld [vmem:[#allocation4 + $0x318] sm:$0xff] }
 0x55f   :  { %1530 = vpow2.f32 %v944_v62  ;;  %v1078_v62 = vld [vmem:[#allocation4 + $0x300] sm:$0xff] }
 0x565   :  { %v1531_v63 = vpop.eup %1530 }
 0x566   :  { %v1484_v1 = vadd.f32 -1.0, %v1531_v63  ;;  %v1079_v63 = vld [vmem:[#allocation4 + $0x308] sm:$0xff] }
 0x568   :  { %v947_v2 = vsel %vm942_vm13, %v941_v30, %v1484_v1  ;;  %v1080_v30 = vld [vmem:[#allocation4 + $0x310] sm:$0xff]  ;;  %v1186_v1 = vld [vmem:[#allocation2 + $0x278] sm:$0xff] }
 0x569   :  { %1004 = vmatmul.f32.vlgmr.msrb.gmra.mxu0 %v947_v2  ;;  %1024 = vmatmul.f32.vlgmr.msrb.gmra.mxu1 %v947_v2  ;;  %v480_v2 = vperm.slane %v1947_v24, 3  ;;  %v1182_v24 = vld [vmem:[#allocation2 + $0x258] sm:$0xff] }
 0x56a   :  { %1131 = vmatpush.msra.mxu3 %v1080_v30  ;;  %1187 = vmatpush.msra.mxu1 %v1186_v1  ;;  %v1228_v30 = vld [vmem:[#allocation4 + $0x468] sm:$0xff] }
 0x56b   :  { %v590_v3 = vadd.f32 %v1950_v48, %v480_v2  ;;  %v1181_v48 = vld [vmem:[#allocation2 + $0x250] sm:$0xff]  ;;  %v1224_v1 = vld [vmem:[#allocation4 + $0x448] sm:$0xff] }
 0x56c   :  { %1132 = vmatpush.msra.mxu3 %v1078_v62  ;;  %1188 = vmatpush.msra.mxu1 %v1185_v9  ;;  %v1226_v62 = vld [vmem:[#allocation4 + $0x458] sm:$0xff]  ;;  %v1221_v2 = vld [vmem:[#allocation4 + $0x430] sm:$0xff] }
 0x56d   :  { %v1314_v9 = vld [vmem:[#allocation2 + $0x2f0] sm:$0xff] }
 0x56e   :  { %1189 = vmatpush.msra.mxu1 %v1184_v10  ;;  %v1313_v10 = vld [vmem:[#allocation2 + $0x2e8] sm:$0xff] }
 0x570   :  { %1190 = vmatpush.msra.mxu1 %v1183_v11  ;;  %v1312_v11 = vld [vmem:[#allocation2 + $0x2e0] sm:$0xff] }
 0x572   :  { %1191 = vmatpush.msra.mxu1 %v1182_v24  ;;  %v2000_v24 = vld [vmem:[%s2036_s11] sm:$0x3f] }
 0x574   :  { %1192 = vmatpush.msra.mxu1 %v1181_v48  ;;  %v481_v48 = vperm.slane %v2000_v24, 4 }
 0x576   :  { %1193 = vmatpush.msra.mxu1 %v1180_v12  ;;  %v610_v12 = vadd.f32 %v1957_v54, %v481_v48  ;;  %v1307_v54 = vld [vmem:[#allocation2 + $0x2b8] sm:$0xff]  ;;  %v1349_v48 = vld [vmem:[#allocation4 + $0x528] sm:$0xff] }
 0x578   :  { %1194 = vmatpush.msra.mxu1 %v1179_v15 }
 0x5e6   :  { %v1005_v47 = vpop.f32.mrf.mxu0  ;;  %v1025_v23 = vpop.f32.mrf.mxu1 }
 0x5e7   :  { %v1006_v17 = vadd.f32 %v1005_v47, %v984_v13  ;;  %v1026_v34 = vadd.f32 %v1025_v23, %v985_v22  ;;  %v1178_v13 = vld [vmem:[#allocation2 + $0x238] sm:$0xff]  ;;  %v1177_v47 = vld [vmem:[#allocation2 + $0x230] sm:$0xff]  ;;  %v1172_v22 = vld [vmem:[#allocation2 + $0x208] sm:$0xff] }
 0x5e8   :  { %1195 = vmatpush.msra.mxu1 %v1178_v13  ;;  %v1171_v23 = vld [vmem:[#allocation2 + $0x200] sm:$0xff] }
 0x5e9   :  { %1532 = vtanh.f32 %v1006_v17  ;;  %v1176_v17 = vld [vmem:[#allocation2 + $0x228] sm:$0xff] }
 0x5ea   :  { %1196 = vmatpush.msra.mxu1 %v1177_v47 }
 0x5ec   :  { %1197 = vmatpush.msra.mxu1 %v1176_v17 }
 0x5ef   :  { %v1533_v18 = vpop.eup %1532 }
 0x5f0   :  { %v1029_v19 = vmul.f32 1.442695, %v1533_v18  ;;  %v1162_v21 = vsel %vm895_vm11, %v1533_v18, 0.0  ;;  %v1175_v18 = vld [vmem:[#allocation2 + $0x220] sm:$0xff] }
 0x5f1   :  { %1163 = vadd.xlane.f32.xlu1 %v1162_v21  ;;  %1198 = vmatpush.msra.mxu1 %v1175_v18  ;;  %v1173_v21 = vld [vmem:[#allocation2 + $0x210] sm:$0xff] }
 0x5f2   :  { %1534 = vpow2.f32 %v1029_v19  ;;  %v1174_v19 = vld [vmem:[#allocation2 + $0x218] sm:$0xff] }
 0x5f3   :  { %1199 = vmatpush.msra.mxu1 %v1174_v19 }
 0x5f5   :  { %1200 = vmatpush.msra.mxu1 %v1173_v21 }
 0x5f7   :  { %1201 = vmatpush.msra.mxu1 %v1172_v22  ;;  %v1311_v22 = vld [vmem:[#allocation2 + $0x2d8] sm:$0xff] }
 0x5f8   :  { %v1535_v45 = vpop.eup %1534 }
 0x5f9   :  { %v1031_v25 = vmul.f32 %v1535_v45, %v1962_v0  ;;  %v1101_v0 = vld [vmem:[#allocation4 + $0x3b8] sm:$0xff]  ;;  %1202 = vmatpush.msra.mxu1 %v1171_v23  ;;  %v1487_v45 = vld [vmem:[%s2039_s14 + $0x6] sm:$0x3]  ;;  %v1310_v23 = vld [vmem:[#allocation2 + $0x2d0] sm:$0xff] }
 0x5fa   :  { %1141 = vmatpush.msra.mxu0 %v1101_v0  ;;  %v1114_v14 = vperm.slane %v1487_v45, 1 }
 0x5fb   :  { %v1984_v26 = vadd.f32 %v1031_v25, %v1026_v34  ;;  %v1113_v34 = vperm.slane %v1487_v45, 0  ;;  %v1309_v45 = vld [vmem:[#allocation2 + $0x2c8] sm:$0xff] }
 0x5fc   :  { %1142 = vmatpush.msra.mxu0 %v1099_v37  ;;  %v1246_v37 = vld [vmem:[#allocation4 + $0x4f8] sm:$0xff] }
 0x5fd   :  { %1066 = vmatmul.f32.vlgmr.msra.gmra.mxu2 %v1984_v26  ;;  %1274 = vmatpush.msrb.mxu3 %v1246_v37 }
 0x5fe   :  { %1143 = vmatpush.msra.mxu0 %v1097_v40  ;;  %v1244_v40 = vld [vmem:[#allocation4 + $0x4e8] sm:$0xff] }
 0x5ff   :  { %1275 = vmatpush.msrb.mxu3 %v1244_v40 }
 0x600   :  { %1144 = vmatpush.msra.mxu0 %v1095_v42  ;;  %v1242_v42 = vld [vmem:[#allocation4 + $0x4d8] sm:$0xff] }
 0x601   :  { %1276 = vmatpush.msrb.mxu3 %v1242_v42 }
 0x602   :  { %1145 = vmatpush.msra.mxu0 %v1093_v44  ;;  %v1240_v44 = vld [vmem:[#allocation4 + $0x4c8] sm:$0xff] }
 0x603   :  { %1277 = vmatpush.msrb.mxu3 %v1240_v44 }
 0x604   :  { %1146 = vmatpush.msra.mxu0 %v1091_v49  ;;  %v1235_v49 = vld [vmem:[#allocation4 + $0x4a0] sm:$0xff] }
 0x605   :  { %1259 = vmatpush.msrb.mxu2 %v1235_v49  ;;  %v1374_v49 = vld [vmem:[#allocation4 + $0x5f0] sm:$0xff] }
 0x606   :  { %1147 = vmatpush.msra.mxu0 %v1089_v52  ;;  %v1233_v52 = vld [vmem:[#allocation4 + $0x490] sm:$0xff]  ;;  %1383 = vmatpush.msrb.mxu1 %v1374_v49 }
 0x607   :  { %1260 = vmatpush.msrb.mxu2 %v1233_v52  ;;  %v1372_v52 = vld [vmem:[#allocation4 + $0x5e0] sm:$0xff] }
 0x608   :  { %1148 = vmatpush.msra.mxu0 %v1087_v55  ;;  %v1231_v55 = vld [vmem:[#allocation4 + $0x480] sm:$0xff]  ;;  %1384 = vmatpush.msrb.mxu1 %v1372_v52 }
 0x609   :  { %1261 = vmatpush.msrb.mxu2 %v1231_v55  ;;  %v1370_v55 = vld [vmem:[#allocation4 + $0x5d0] sm:$0xff] }
 0x60a   :  { %1149 = vmatpush.msra.mxu0 %v1085_v57  ;;  %v1229_v57 = vld [vmem:[#allocation4 + $0x470] sm:$0xff]  ;;  %1385 = vmatpush.msrb.mxu1 %v1370_v55 }
 0x60b   :  { %1262 = vmatpush.msrb.mxu2 %v1229_v57  ;;  %v1368_v57 = vld [vmem:[#allocation4 + $0x5c0] sm:$0xff] }
 0x60c   :  { %1150 = vmatpush.msra.mxu0 %v1083_v59  ;;  %v1227_v59 = vld [vmem:[#allocation4 + $0x460] sm:$0xff]  ;;  %1386 = vmatpush.msrb.mxu1 %v1368_v57 }
 0x60d   :  { %1263 = vmatpush.msrb.mxu2 %v1227_v59  ;;  %v1367_v59 = vld [vmem:[#allocation4 + $0x5b8] sm:$0xff] }
 0x60e   :  { %1151 = vmatpush.msra.mxu0 %v1081_v60  ;;  %v1225_v60 = vld [vmem:[#allocation4 + $0x450] sm:$0xff] }
 0x60f   :  { %1264 = vmatpush.msrb.mxu2 %v1225_v60  ;;  %v1365_v60 = vld [vmem:[#allocation4 + $0x5a8] sm:$0xff] }
 0x610   :  { %1152 = vmatpush.msra.mxu0 %v1079_v63  ;;  %v1223_v63 = vld [vmem:[#allocation4 + $0x440] sm:$0xff] }
 0x611   :  { %1265 = vmatpush.msrb.mxu2 %v1223_v63  ;;  %v1363_v63 = vld [vmem:[#allocation4 + $0x598] sm:$0xff] }
 0x613   :  { %1266 = vmatpush.msrb.mxu2 %v1221_v2  ;;  %v1361_v2 = vld [vmem:[#allocation4 + $0x588] sm:$0xff] }
 0x680   :  { %v1067_v4 = vpop.f32.mrf.mxu2 }
 0x681   :  { %v1070_v5 = vadd.f32 %v1067_v4, %v590_v3  ;;  %v1222_v3 = vld [vmem:[#allocation4 + $0x438] sm:$0xff]  ;;  %v1219_v4 = vld [vmem:[#allocation4 + $0x420] sm:$0xff] }
 0x682   :  { %1267 = vmatpush.msrb.mxu2 %v1219_v4  ;;  %v1359_v4 = vld [vmem:[#allocation4 + $0x578] sm:$0xff] }
 0x683   :  { %v1072_v6 = vmin.f32 %v1070_v5, 0.0  ;;  %vm1071_vm14 = vcmp.gt.f32.partialorder %v1070_v5, 0.0 }
 0x685   :  { %v1073_v51 = vmul.f32 1.442695, %v1072_v6  ;;  %v1217_v6 = vld [vmem:[#allocation4 + $0x410] sm:$0xff] }
 0x686   :  { %1268 = vmatpush.msrb.mxu2 %v1217_v6  ;;  %v1357_v6 = vld [vmem:[#allocation4 + $0x568] sm:$0xff] }
 0x687   :  { %1536 = vpow2.f32 %v1073_v51  ;;  %v1218_v51 = vld [vmem:[#allocation4 + $0x418] sm:$0xff] }
 0x68d   :  { %v1537_v7 = vpop.eup %1536 }
 0x68e   :  { %v1486_v20 = vadd.f32 -1.0, %v1537_v7  ;;  %v1215_v7 = vld [vmem:[#allocation4 + $0x400] sm:$0xff] }
 0x68f   :  { %1269 = vmatpush.msrb.mxu2 %v1215_v7  ;;  %v1355_v7 = vld [vmem:[#allocation4 + $0x558] sm:$0xff] }
 0x690   :  { %v1076_v8 = vsel %vm1071_vm14, %v1070_v5, %v1486_v20  ;;  %v1220_v5 = vld [vmem:[#allocation4 + $0x428] sm:$0xff] }
 0x691   :  { %1133 = vmatmul.f32.vlgmr.msra.gmra.mxu3 %v1076_v8  ;;  %1153 = vmatmul.f32.vlgmr.msra.gmra.mxu0 %v1076_v8  ;;  %v1216_v20 = vld [vmem:[#allocation4 + $0x408] sm:$0xff]  ;;  %v1315_v8 = vld [vmem:[#allocation2 + $0x2f8] sm:$0xff] }
 0x692   :  { %1316 = vmatpush.msrb.mxu0 %v1315_v8  ;;  %v1353_v8 = vld [vmem:[#allocation4 + $0x548] sm:$0xff] }
 0x694   :  { %1317 = vmatpush.msrb.mxu0 %v1314_v9  ;;  %v1350_v9 = vld [vmem:[#allocation4 + $0x530] sm:$0xff] }
 0x696   :  { %1318 = vmatpush.msrb.mxu0 %v1313_v10  ;;  %v1351_v10 = vld [vmem:[#allocation4 + $0x538] sm:$0xff] }
 0x698   :  { %1319 = vmatpush.msrb.mxu0 %v1312_v11  ;;  %v1348_v11 = vld [vmem:[#allocation4 + $0x520] sm:$0xff] }
 0x69a   :  { %1320 = vmatpush.msrb.mxu0 %v1311_v22 }
 0x69c   :  { %1321 = vmatpush.msrb.mxu0 %v1310_v23 }
 0x69e   :  { %1322 = vmatpush.msrb.mxu0 %v1309_v45 }
 0x70e   :  { %v1154_v31 = vpop.f32.mrf.mxu0 }
 0x70f   :  { %v1155_v33 = vadd.f32 %v1154_v31, %v1114_v14  ;;  %v1301_v14 = vld [vmem:[#allocation2 + $0x288] sm:$0xff]  ;;  %v1300_v31 = vld [vmem:[#allocation2 + $0x280] sm:$0xff] }
 0x714   :  { %v1134_v25 = vpop.f32.mrf.mxu3 }
 0x715   :  { %v1135_v27 = vadd.f32 %v1134_v25, %v1113_v34  ;;  %v1308_v34 = vld [vmem:[#allocation2 + $0x2c0] sm:$0xff]  ;;  %v1306_v25 = vld [vmem:[#allocation2 + $0x2b0] sm:$0xff] }
 0x716   :  { %1323 = vmatpush.msrb.mxu0 %v1308_v34 }
 0x717   :  { %1538 = vtanh.f32 %v1135_v27  ;;  %v1305_v27 = vld [vmem:[#allocation2 + $0x2a8] sm:$0xff] }
 0x718   :  { %1324 = vmatpush.msrb.mxu0 %v1307_v54 }
 0x71a   :  { %1325 = vmatpush.msrb.mxu0 %v1306_v25  ;;  %v1491_v25 = vld [vmem:[%s2039_s14 + $0xa] sm:$0x3] }
 0x71c   :  { %1326 = vmatpush.msrb.mxu0 %v1305_v27  ;;  %v1379_v27 = vperm.slane %v1491_v25, 0 }
 0x71d   :  { %v1539_v28 = vpop.eup %1538 }
 0x71e   :  { %v1158_v29 = vmul.f32 1.442695, %v1539_v28  ;;  %v1166_v61 = vsel %vm895_vm11, %v1539_v28, 0.0  ;;  %v1304_v28 = vld [vmem:[#allocation2 + $0x2a0] sm:$0xff] }
 0x71f   :  { %1167 = vadd.xlane.f32.xlu2 %v1166_v61  ;;  %1327 = vmatpush.msrb.mxu0 %v1304_v28  ;;  %v1302_v61 = vld [vmem:[#allocation2 + $0x290] sm:$0xff] }
 0x720   :  { %1540 = vpow2.f32 %v1158_v29  ;;  %v1303_v29 = vld [vmem:[#allocation2 + $0x298] sm:$0xff] }
 0x721   :  { %1328 = vmatpush.msrb.mxu0 %v1303_v29 }
 0x723   :  { %1329 = vmatpush.msrb.mxu0 %v1302_v61 }
 0x725   :  { %1330 = vmatpush.msrb.mxu0 %v1301_v14  ;;  %v1380_v14 = vperm.slane %v1491_v25, 1 }
 0x726   :  { %v1541_v32 = vpop.eup %1540 }
 0x727   :  { %v1160_v35 = vmul.f32 %v1541_v32, %v1974_v16  ;;  %v1238_v16 = vld [vmem:[#allocation4 + $0x4b8] sm:$0xff]  ;;  %1331 = vmatpush.msrb.mxu0 %v1300_v31  ;;  %v1489_v32 = vld [vmem:[%s2039_s14 + $0x8] sm:$0x3] }
 0x728   :  { %1278 = vmatpush.msrb.mxu3 %v1238_v16  ;;  %v1251_v41 = vperm.slane %v1489_v32, 1 }
 0x729   :  { %v1994_v0 = vadd.f32 %v1160_v35, %v1155_v33  ;;  %v1250_v33 = vperm.slane %v1489_v32, 0 }
 0x72a   :  { %1279 = vmatpush.msrb.mxu3 %v1236_v50  ;;  %v1375_v50 = vld [vmem:[#allocation4 + $0x5f8] sm:$0xff] }
 0x72b   :  { %1203 = vmatmul.f32.vlgmr.msra.gmra.mxu1 %v1994_v0  ;;  %1403 = vmatpush.msra.mxu2 %v1375_v50 }
 0x72c   :  { %1280 = vmatpush.msrb.mxu3 %v1234_v53  ;;  %v1373_v53 = vld [vmem:[#allocation4 + $0x5e8] sm:$0xff] }
 0x72d   :  { %1404 = vmatpush.msra.mxu2 %v1373_v53 }
 0x72e   :  { %1281 = vmatpush.msrb.mxu3 %v1232_v56  ;;  %v1371_v56 = vld [vmem:[#allocation4 + $0x5d8] sm:$0xff] }
 0x72f   :  { %1405 = vmatpush.msra.mxu2 %v1371_v56 }
 0x730   :  { %1282 = vmatpush.msrb.mxu3 %v1230_v58  ;;  %v1369_v58 = vld [vmem:[#allocation4 + $0x5c8] sm:$0xff] }
 0x731   :  { %1406 = vmatpush.msra.mxu2 %v1369_v58 }
 0x732   :  { %1283 = vmatpush.msrb.mxu3 %v1228_v30  ;;  %v1364_v30 = vld [vmem:[#allocation4 + $0x5a0] sm:$0xff] }
 0x733   :  { %1407 = vmatpush.msra.mxu2 %v1367_v59 }
 0x734   :  { %1284 = vmatpush.msrb.mxu3 %v1226_v62  ;;  %v1362_v62 = vld [vmem:[#allocation4 + $0x590] sm:$0xff] }
 0x735   :  { %1408 = vmatpush.msra.mxu2 %v1365_v60 }
 0x736   :  { %1285 = vmatpush.msrb.mxu3 %v1224_v1  ;;  %v1360_v1 = vld [vmem:[#allocation4 + $0x580] sm:$0xff] }
 0x737   :  { %1409 = vmatpush.msra.mxu2 %v1363_v63 }
 0x738   :  { %1286 = vmatpush.msrb.mxu3 %v1222_v3  ;;  %v1358_v3 = vld [vmem:[#allocation4 + $0x570] sm:$0xff] }
 0x739   :  { %1410 = vmatpush.msra.mxu2 %v1361_v2 }
 0x73a   :  { %1287 = vmatpush.msrb.mxu3 %v1220_v5  ;;  %v1356_v5 = vld [vmem:[#allocation4 + $0x560] sm:$0xff] }
 0x73b   :  { %1411 = vmatpush.msra.mxu2 %v1359_v4 }
 0x73c   :  { %1288 = vmatpush.msrb.mxu3 %v1218_v51  ;;  %v1354_v51 = vld [vmem:[#allocation4 + $0x550] sm:$0xff] }
 0x73d   :  { %1412 = vmatpush.msra.mxu2 %v1357_v6 }
 0x73e   :  { %1289 = vmatpush.msrb.mxu3 %v1216_v20  ;;  %v1352_v20 = vld [vmem:[#allocation4 + $0x540] sm:$0xff] }
 0x73f   :  { %1413 = vmatpush.msra.mxu2 %v1355_v7 }
 0x741   :  { %1414 = vmatpush.msra.mxu2 %v1353_v8 }
 0x743   :  { %1415 = vmatpush.msra.mxu2 %v1351_v10 }
 0x745   :  { %1416 = vmatpush.msra.mxu2 %v1349_v48 }
 0x7a8   :  { %v1204_v15 = vpop.f32.mrf.mxu1 }
 0x7a9   :  { %v1207_v13 = vadd.f32 %v1204_v15, %v610_v12  ;;  %v1346_v12 = vld [vmem:[#allocation4 + $0x510] sm:$0xff]  ;;  %v1347_v15 = vld [vmem:[#allocation4 + $0x518] sm:$0xff] }
 0x7aa   :  { %1417 = vmatpush.msra.mxu2 %v1347_v15 }
 0x7ab   :  { %v1209_v47 = vmin.f32 %v1207_v13, 0.0  ;;  %vm1208_vm15 = vcmp.gt.f32.partialorder %v1207_v13, 0.0 }
 0x7ad   :  { %v1210_v17 = vmul.f32 1.442695, %v1209_v47  ;;  %v1345_v47 = vld [vmem:[#allocation4 + $0x508] sm:$0xff] }
 0x7ae   :  { %1418 = vmatpush.msra.mxu2 %v1345_v47 }
 0x7af   :  { %1542 = vpow2.f32 %v1210_v17  ;;  %v482_v17 = vperm.slane %v2000_v24, 5 }
 0x7b5   :  { %v1543_v18 = vpop.eup %1542 }
 0x7b6   :  { %v1488_v19 = vadd.f32 -1.0, %v1543_v18  ;;  %v630_v18 = vadd.f32 %v1965_v38, %v482_v17 }
 0x7b8   :  { %v1213_v21 = vsel %vm1208_vm15, %v1207_v13, %v1488_v19  ;;  %v1344_v13 = vld [vmem:[#allocation4 + $0x500] sm:$0xff] }
 0x7b9   :  { %1270 = vmatmul.f32.vlgmr.msrb.gmra.mxu2 %v1213_v21  ;;  %1290 = vmatmul.f32.vlgmr.msrb.gmra.mxu3 %v1213_v21 }
 0x83c   :  { %v1271_v35 = vpop.f32.mrf.mxu2  ;;  %v1291_v42 = vpop.f32.mrf.mxu3 }
 0x83d   :  { %v1272_v36 = vadd.f32 %v1271_v35, %v1250_v33  ;;  %v1292_v44 = vadd.f32 %v1291_v42, %v1251_v41 }
 0x83f   :  { %1544 = vtanh.f32 %v1272_v36 }
 0x845   :  { %v1545_v37 = vpop.eup %1544 }
 0x846   :  { %v1295_v39 = vmul.f32 1.442695, %v1545_v37  ;;  %v1428_v40 = vsel %vm895_vm11, %v1545_v37, 0.0  ;;  %v902_v37 = vpop.xlane.xlu1 %901 }
 0x847   :  { %1429 = vadd.xlane.f32.xlu2 %v1428_v40  ;;  %v898_v40 = vpop.xlane.xlu0 %897 }
 0x848   :  { %1546 = vpow2.f32 %v1295_v39  ;;  %v1168_v39 = vpop.xlane.xlu2 %1167  ;;  %v903_v42 = vadd.f32 %v902_v37, %v898_v40 }
 0x84e   :  { %v1547_v43 = vpop.eup %1546  ;;  %v1164_v41 = vpop.xlane.xlu1 %1163 }
 0x84f   :  { %v1297_v46 = vmul.f32 %v1547_v43, %v1984_v26  ;;  %v1366_v26 = vld [vmem:[#allocation4 + $0x5b0] sm:$0xff]  ;;  %v1165_v43 = vadd.f32 %v1164_v41, %v903_v42 }
 0x850   :  { %1387 = vmatpush.msrb.mxu1 %v1366_v26 }
 0x851   :  { %v1298_v16 = vadd.f32 %v1297_v46, %v1292_v44  ;;  %v1169_v46 = vadd.f32 %v1168_v39, %v1165_v43 }
 0x852   :  { %1388 = vmatpush.msrb.mxu1 %v1364_v30 }
 0x853   :  { %1436 = vst [vmem:[%s2040_s15] sm:$0xf] %v1298_v16  ;;  %1332 = vmatmul.f32.vlgmr.msrb.gmra.mxu0 %v1298_v16 }
 0x854   :  { %1389 = vmatpush.msrb.mxu1 %v1362_v62 }
 0x856   :  { %1390 = vmatpush.msrb.mxu1 %v1360_v1 }
 0x858   :  { %1391 = vmatpush.msrb.mxu1 %v1358_v3 }
 0x85a   :  { %1392 = vmatpush.msrb.mxu1 %v1356_v5 }
 0x85c   :  { %1393 = vmatpush.msrb.mxu1 %v1354_v51 }
 0x85e   :  { %1394 = vmatpush.msrb.mxu1 %v1352_v20 }
 0x860   :  { %1395 = vmatpush.msrb.mxu1 %v1350_v9 }
 0x862   :  { %1396 = vmatpush.msrb.mxu1 %v1348_v11 }
 0x864   :  { %1397 = vmatpush.msrb.mxu1 %v1346_v12 }
 0x866   :  { %1398 = vmatpush.msrb.mxu1 %v1344_v13 }
 0x8ba   :  { %v1430_v44 = vpop.xlane.xlu2 %1429 }
 0x8bb   :  { %v1431_v16 = vadd.f32 %v1430_v44, %v1169_v46 }
 0x8d0   :  { %v1333_v19 = vpop.f32.mrf.mxu0 }
 0x8d1   :  { %v1336_v21 = vadd.f32 %v1333_v19, %v630_v18 }
 0x8d3   :  { %v1338_v22 = vmin.f32 %v1336_v21, 0.0  ;;  %vm1337_vm0 = vcmp.gt.f32.partialorder %v1336_v21, 0.0 }
 0x8d5   :  { %v1339_v23 = vmul.f32 1.442695, %v1338_v22 }
 0x8d7   :  { %1548 = vpow2.f32 %v1339_v23 }
 0x8dd   :  { %v1549_v45 = vpop.eup %1548 }
 0x8de   :  { %v1490_v34 = vadd.f32 -1.0, %v1549_v45 }
 0x8e0   :  { %v1342_v54 = vsel %vm1337_vm0, %v1336_v21, %v1490_v34 }
 0x8e1   :  { %1399 = vmatmul.f32.vlgmr.msrb.gmra.mxu1 %v1342_v54  ;;  %1419 = vmatmul.f32.vlgmr.msra.gmra.mxu2 %v1342_v54 }
 0x95e   :  { %v1400_v28 = vpop.f32.mrf.mxu1 }
 0x95f   :  { %v1401_v24 = vadd.f32 %v1400_v28, %v1379_v27 }
 0x961   :  { %1550 = vtanh.f32 %v1401_v24 }
 0x964   :  { %v1420_v31 = vpop.f32.mrf.mxu2 }
 0x965   :  { %v1421_v33 = vadd.f32 %v1420_v31, %v1380_v14 }
 0x967   :  { %v1551_v38 = vpop.eup %1550 }
 0x968   :  { %v1424_v29 = vmul.f32 1.442695, %v1551_v38  ;;  %v1432_v61 = vsel %vm895_vm11, %v1551_v38, 0.0 }
 0x969   :  { %1433 = vadd.xlane.f32.xlu1 %v1432_v61 }
 0x96a   :  { %1552 = vpow2.f32 %v1424_v29 }
 0x970   :  { %v1553_v32 = vpop.eup %1552 }
 0x971   :  { %v1426_v35 = vmul.f32 %v1553_v32, %v1994_v0 }
 0x973   :  { %v1427_v36 = vadd.f32 %v1426_v35, %v1421_v33 }
 0x975   :  { %1437 = vst [vmem:[%s2041_s16] sm:$0xf] %v1427_v36 }
 0x9dc   :  { %v1434_v49 = vpop.xlane.xlu1 %1433 }
 0x9dd   :  { %v1435_v50 = vadd.f32 %v1434_v49, %v1431_v16 }
 0x9df   :  { %1439 = vst.msk [vmem:[%s2042_s17] sm:$0xf] %vm1438_vm1, %v1435_v50 }
 0x9e0   :  { %1452 = vsyncpa [#allocation3], 1 }
 0x9e1   :  { %1453 = vsyncpa [#allocation5], 1 }

</bundles_post_ra>
